<compile_context>
chip_gen: v5e
topology: v5e:2x2
jax: 0.10.0
libtpu: 0.0.40
codegen_flags: <defaults>
</compile_context>

<pallas_src>
import functools

import jax
import jax.numpy as jnp
from jax import lax
from jax.experimental import pallas as pl
from jax.experimental.pallas import tpu as pltpu


def _self_attention_kernel(x_ref, wqkv_ref, bqkv_ref, gamma_ref, o_ref,
                           q_sc, k_sc, v_sc, *, tq, cqk_pad):
    qi = pl.program_id(1)

    # ---- per-batch setup: stacked QKV projection, computed once and kept in VMEM scratch ----
    @pl.when(qi == 0)
    def _():
        x_full = x_ref[0].astype(jnp.float32)                                # (C, HW)
        proj = jnp.dot(wqkv_ref[...], x_full,
                       preferred_element_type=jnp.float32) + bqkv_ref[...]  # (2*cqk_pad + C, HW)
        q_sc[...] = proj[:cqk_pad]                                           # (cqk_pad, HW)
        k_sc[...] = proj[cqk_pad:2 * cqk_pad]                                # (cqk_pad, HW)
        v_sc[...] = proj[2 * cqk_pad:].astype(jnp.bfloat16)                  # (C, HW) bf16

    # ---- per query tile ----
    q_start = pl.multiple_of(qi * tq, tq)
    q_tile = q_sc[:, pl.ds(q_start, tq)]                                     # (cqk_pad, TQ) f32

    # energy_T[j, i] = sum_c k[c, j] * q[c, i]   -> (HW_keys, TQ)
    # (zero-padded Q/K channels contribute exactly 0)
    energy_t = lax.dot_general(k_sc[...], q_tile, (((0,), (0,)), ((), ())),
                               preferred_element_type=jnp.float32)

    # stabilised softmax over the key axis (axis 0); normalisation deferred to the output
    m = jnp.max(energy_t, axis=0, keepdims=True)                             # (1, TQ)
    p = jnp.exp(energy_t - m)                                                # (HW, TQ) f32
    s = jnp.sum(p, axis=0, keepdims=True)                                    # (1, TQ)

    # out[c, i] = sum_j v[c, j] * p[j, i]  -> (C, TQ); plain MXU form, bf16 operands / f32 acc
    out = jnp.dot(v_sc[...], p.astype(jnp.bfloat16),
                  preferred_element_type=jnp.float32)                        # (C, TQ)
    out = out * pl.reciprocal(s, approx=True)                                # deferred 1/row_sum

    x_q = x_ref[0, :, pl.ds(q_start, tq)].astype(jnp.float32)                # (C, TQ) residual
    gamma = gamma_ref[0]                                                     # SMEM scalar
    o_ref[0] = (gamma * out + x_q).astype(o_ref.dtype)


def _pick_tq(hw, tq):
    if tq is not None and tq % 128 == 0 and hw % tq == 0 and tq <= hw:
        return tq
    if hw <= 512 or hw % 128 != 0:
        return hw                      # single query tile (also the non-128-multiple fallback)
    return 256 if hw % 256 == 0 else 128


def self_attention(x, params, *, tq=None):
    """x: (N, C, H, W) NCHW -> (N, C, H, W).  Matches PyTorch SelfAttention.forward."""
    B, C, H, W = x.shape
    HW = H * W
    cqk = C // 8
    assert cqk >= 1, "in_channels must be >= 8 (module uses in_channels // 8 Q/K channels)"

    tq = _pick_tq(HW, tq)
    nq = HW // tq

    # Zero-pad the Q/K projection rows up to a sublane multiple (>= 8) and stack [Wq; Wk; Wv].
    cqk_pad = max(8, ((cqk + 7) // 8) * 8)
    c_out = 2 * cqk_pad + C
    w_qkv = jnp.zeros((c_out, C), jnp.float32)
    w_qkv = w_qkv.at[:cqk].set(params["wq"].astype(jnp.float32))
    w_qkv = w_qkv.at[cqk_pad:cqk_pad + cqk].set(params["wk"].astype(jnp.float32))
    w_qkv = w_qkv.at[2 * cqk_pad:].set(params["wv"].astype(jnp.float32))
    b_qkv = jnp.zeros((c_out, 1), jnp.float32)
    b_qkv = b_qkv.at[:cqk, 0].set(params["bq"].astype(jnp.float32))
    b_qkv = b_qkv.at[cqk_pad:cqk_pad + cqk, 0].set(params["bk"].astype(jnp.float32))
    b_qkv = b_qkv.at[2 * cqk_pad:, 0].set(params["bv"].astype(jnp.float32))
    gamma = params["gamma"].reshape(1).astype(jnp.float32)

    x3 = x.reshape(B, C, HW)           # contiguous NCHW view — no transpose passes in HBM

    kernel = functools.partial(_self_attention_kernel, tq=tq, cqk_pad=cqk_pad)

    out = pl.pallas_call(
        kernel,
        out_shape=jax.ShapeDtypeStruct((B, C, HW), x.dtype),
        grid_spec=pltpu.PrefetchScalarGridSpec(
            num_scalar_prefetch=0,
            grid=(B, nq),
            in_specs=[
                pl.BlockSpec((1, C, HW), lambda b, i: (b, 0, 0)),       # x, VMEM-resident per batch
                pl.BlockSpec((c_out, C), lambda b, i: (0, 0)),          # stacked [Wq; Wk; Wv]
                pl.BlockSpec((c_out, 1), lambda b, i: (0, 0)),          # stacked biases
                pl.BlockSpec(memory_space=pltpu.MemorySpace.SMEM),      # gamma scalar
            ],
            out_specs=pl.BlockSpec((1, C, tq), lambda b, i: (b, 0, i)),
            scratch_shapes=[
                pltpu.VMEM((cqk_pad, HW), jnp.float32),     # Q (hoisted, all query positions)
                pltpu.VMEM((cqk_pad, HW), jnp.float32),     # K (hoisted)
                pltpu.VMEM((C, HW), jnp.bfloat16),          # V (hoisted, bf16 matmul operand)
            ],
        ),
        compiler_params=pltpu.CompilerParams(
            # query-tile axis must be "arbitrary": per-batch scratch carries across its iterations
            dimension_semantics=("parallel", "arbitrary"),
            vmem_limit_bytes=64 * 1024 * 1024,
        ),
    )(x3, w_qkv, b_qkv, gamma)

    return out.reshape(B, C, H, W)


def init_params(key, C):
    cqk = C // 8
    ks = jax.random.split(key, 6)
    return {
        # conv2d 1x1 weights stored as (C_out, C_in) matrices; biases (C_out,)
        "wq": jax.random.normal(ks[0], (cqk, C), jnp.float32) * 0.2,
        "bq": jax.random.normal(ks[1], (cqk,), jnp.float32) * 0.1,
        "wk": jax.random.normal(ks[2], (cqk, C), jnp.float32) * 0.2,
        "bk": jax.random.normal(ks[3], (cqk,), jnp.float32) * 0.1,
        "wv": jax.random.normal(ks[4], (C, C), jnp.float32) * 0.2,
        "bv": jax.random.normal(ks[5], (C,), jnp.float32) * 0.1,
        # PyTorch initializes gamma to 0 (output == x exactly); use a nonzero value here
        # so the attention path is actually exercised by the correctness check.
        "gamma": jnp.array([0.7], jnp.float32),
    }


def _reference(x, params):
    # Pure-JAX mirror of the PyTorch forward.
    B, C, H, W = x.shape
    HW = H * W
    hp = jax.lax.Precision.HIGHEST
    xm = x.reshape(B, C, HW)
    q = jnp.einsum("oc,bcs->bos", params["wq"], xm, precision=hp) + params["bq"][None, :, None]
    k = jnp.einsum("oc,bcs->bos", params["wk"], xm, precision=hp) + params["bk"][None, :, None]
    v = jnp.einsum("oc,bcs->bos", params["wv"], xm, precision=hp) + params["bv"][None, :, None]
    energy = jnp.einsum("bci,bcj->bij", q, k, precision=hp)        # (B, HW, HW)
    attn = jax.nn.softmax(energy, axis=-1)
    out = jnp.einsum("bcj,bij->bci", v, attn, precision=hp)        # (B, C, HW)
    return params["gamma"] * out.reshape(B, C, H, W) + x


if __name__ == "__main__":
    key = jax.random.PRNGKey(0)
    kx, kp = jax.random.split(key)

    # in_channels must be >= 8 because the module uses in_channels // 8 Q/K channels.
    B, C, H, W = 2, 32, 16, 16
    x = jax.random.normal(kx, (B, C, H, W), jnp.float32)
    params = init_params(kp, C)
    ref = _reference(x, params)

    # bf16 attn@V operands + approx reciprocal -> tolerance looser than pure-f32 would need.
    tol = dict(atol=2e-2, rtol=2e-2)

    # 1) default tiling: HW=256 <= 512 -> single query tile per batch
    out = jax.block_until_ready(self_attention(x, params))
    assert out.shape == (B, C, H, W)
    assert jnp.allclose(out, ref, **tol), float(jnp.max(jnp.abs(out - ref)))

    # 2) forced tq=128: two query tiles per batch, exercises the hoisted-scratch carry path
    out2 = jax.block_until_ready(self_attention(x, params, tq=128))
    assert jnp.allclose(out2, ref, **tol), float(jnp.max(jnp.abs(out2 - ref)))

    print("KERNEL_OK")
</pallas_src>

<mosaic_0001>
module attributes {stable_mosaic.version = 11 : i64} {
  func.func @_self_attention_kernel(%arg0: i32, %arg1: i32, %arg2: memref<1x32x256xf32, #tpu.memory_space<vmem>>, %arg3: memref<48x32xf32, #tpu.memory_space<vmem>>, %arg4: memref<48x1xf32, #tpu.memory_space<vmem>>, %arg5: memref<1xf32, #tpu.memory_space<smem>>, %arg6: memref<1x32x256xf32, #tpu.memory_space<vmem>>, %arg7: memref<8x256xf32, #tpu.memory_space<vmem>>, %arg8: memref<8x256xf32, #tpu.memory_space<vmem>>, %arg9: memref<32x256xbf16, #tpu.memory_space<vmem>>) attributes {dimension_semantics = [#tpu.dimension_semantics<parallel>, #tpu.dimension_semantics<arbitrary>], iteration_bounds = array<i64: 2, 1>, scalar_prefetch = 0 : i64, scratch_operands = 3 : i64, tpu.core_type = #tpu.core_type<tc>, window_params = [{transform_indices = @transform_0, window_bounds = array<i64: 1, 32, 256>}, {pipeline_mode = #tpu.pipeline_mode<synchronous>, transform_indices = @transform_1, window_bounds = array<i64: 48, 32>}, {pipeline_mode = #tpu.pipeline_mode<synchronous>, transform_indices = @transform_2, window_bounds = array<i64: 48, 1>}, {transform_indices = @transform_3, window_bounds = array<i64: 1>}, {transform_indices = @transform_4, window_bounds = array<i64: 1, 32, 256>}]} {
    %c0_i32 = arith.constant 0 : i32
    %0 = arith.cmpi eq, %arg1, %c0_i32 : i32
    %1 = arith.extui %0 : i1 to i32
    %c0_i32_0 = arith.constant 0 : i32
    %2 = arith.cmpi ne, %1, %c0_i32_0 : i32
    scf.if %2 {
      %c0_14 = arith.constant 0 : index
      %c0_15 = arith.constant 0 : index
      %c0_16 = arith.constant 0 : index
      %32 = vector.load %arg2[%c0_14, %c0_15, %c0_16] : memref<1x32x256xf32, #tpu.memory_space<vmem>>, vector<1x32x256xf32>
      %33 = vector.shape_cast %32 : vector<1x32x256xf32> to vector<32x256xf32>
      %c0_17 = arith.constant 0 : index
      %c0_18 = arith.constant 0 : index
      %34 = vector.load %arg3[%c0_17, %c0_18] : memref<48x32xf32, #tpu.memory_space<vmem>>, vector<48x32xf32>
      %cst_19 = arith.constant dense<0.000000e+00> : vector<48x256xf32>
      %35 = tpu.matmul %34, %33, %cst_19 {dimension_numbers = #tpu.dot_dimension_numbers<[1], [0], [0], [1], [0, 0, 1, 1], [], []>} : vector<48x32xf32>, vector<32x256xf32>, vector<48x256xf32> -> vector<48x256xf32>
      %c0_20 = arith.constant 0 : index
      %c0_21 = arith.constant 0 : index
      %36 = vector.load %arg4[%c0_20, %c0_21] : memref<48x1xf32, #tpu.memory_space<vmem>>, vector<48x1xf32>
      %37 = vector.broadcast %36 : vector<48x1xf32> to vector<48x256xf32>
      %38 = arith.addf %35, %37 : vector<48x256xf32>
      %39 = vector.extract_strided_slice %38 {offsets = [0, 0], sizes = [8, 256], strides = [1, 1]} : vector<48x256xf32> to vector<8x256xf32>
      %c0_22 = arith.constant 0 : index
      %c0_23 = arith.constant 0 : index
      %40 = vector.load %arg7[%c0_22, %c0_23] : memref<8x256xf32, #tpu.memory_space<vmem>>, vector<8x256xf32>
      tpu.vector_store %arg7[%c0_22, %c0_23], %39 {strides = array<i32>} : memref<8x256xf32, #tpu.memory_space<vmem>>, vector<8x256xf32>,
      %41 = vector.extract_strided_slice %38 {offsets = [8, 0], sizes = [8, 256], strides = [1, 1]} : vector<48x256xf32> to vector<8x256xf32>
      %c0_24 = arith.constant 0 : index
      %c0_25 = arith.constant 0 : index
      %42 = vector.load %arg8[%c0_24, %c0_25] : memref<8x256xf32, #tpu.memory_space<vmem>>, vector<8x256xf32>
      tpu.vector_store %arg8[%c0_24, %c0_25], %41 {strides = array<i32>} : memref<8x256xf32, #tpu.memory_space<vmem>>, vector<8x256xf32>,
      %43 = vector.extract_strided_slice %38 {offsets = [16, 0], sizes = [32, 256], strides = [1, 1]} : vector<48x256xf32> to vector<32x256xf32>
      %44 = arith.truncf %43 : vector<32x256xf32> to vector<32x256xbf16>
      %c0_26 = arith.constant 0 : index
      %c0_27 = arith.constant 0 : index
      %45 = vector.load %arg9[%c0_26, %c0_27] : memref<32x256xbf16, #tpu.memory_space<vmem>>, vector<32x256xbf16>
      tpu.vector_store %arg9[%c0_26, %c0_27], %44 {strides = array<i32>} : memref<32x256xbf16, #tpu.memory_space<vmem>>, vector<32x256xbf16>,
    } else {
    }
    %c256_i32 = arith.constant 256 : i32
    %3 = arith.muli %arg1, %c256_i32 : i32
    %4 = tpu.assume_multiple %3, 256 : i32
    %c0 = arith.constant 0 : index
    %5 = arith.index_cast %4 : i32 to index
    %6 = vector.load %arg7[%c0, %5] : memref<8x256xf32, #tpu.memory_space<vmem>>, vector<8x256xf32>
    %c0_1 = arith.constant 0 : index
    %c0_2 = arith.constant 0 : index
    %7 = vector.load %arg8[%c0_1, %c0_2] : memref<8x256xf32, #tpu.memory_space<vmem>>, vector<8x256xf32>
    %cst = arith.constant dense<0.000000e+00> : vector<256x256xf32>
    %8 = tpu.matmul %7, %6, %cst {dimension_numbers = #tpu.dot_dimension_numbers<[0], [0], [1], [1], [0, 1, 1, 1], [], []>} : vector<8x256xf32>, vector<8x256xf32>, vector<256x256xf32> -> vector<256x256xf32>
    %cst_3 = arith.constant dense<0xFF800000> : vector<256xf32>
    %9 = vector.multi_reduction <maximumf>, %8, %cst_3 [0] : vector<256x256xf32> to vector<256xf32>
    %10 = vector.shape_cast %9 : vector<256xf32> to vector<1x256xf32>
    %11 = vector.broadcast %10 : vector<1x256xf32> to vector<256x256xf32>
    %12 = arith.subf %8, %11 : vector<256x256xf32>
    %13 = math.exp %12 : vector<256x256xf32>
    %cst_4 = arith.constant dense<0.000000e+00> : vector<256xf32>
    %14 = vector.multi_reduction <add>, %13, %cst_4 [0] : vector<256x256xf32> to vector<256xf32>
    %15 = vector.shape_cast %14 : vector<256xf32> to vector<1x256xf32>
    %c0_5 = arith.constant 0 : index
    %c0_6 = arith.constant 0 : index
    %16 = vector.load %arg9[%c0_5, %c0_6] : memref<32x256xbf16, #tpu.memory_space<vmem>>, vector<32x256xbf16>
    %17 = arith.truncf %13 : vector<256x256xf32> to vector<256x256xbf16>
    %cst_7 = arith.constant dense<0.000000e+00> : vector<32x256xf32>
    %18 = tpu.matmul %16, %17, %cst_7 {dimension_numbers = #tpu.dot_dimension_numbers<[1], [0], [0], [1], [0, 0, 1, 1], [], []>} : vector<32x256xbf16>, vector<256x256xbf16>, vector<32x256xf32> -> vector<32x256xf32>
    %19 = tpu.reciprocal %15 {approx = true} : vector<1x256xf32> -> vector<1x256xf32>
    %20 = vector.broadcast %19 : vector<1x256xf32> to vector<32x256xf32>
    %21 = arith.mulf %18, %20 : vector<32x256xf32>
    %c0_8 = arith.constant 0 : index
    %c0_9 = arith.constant 0 : index
    %22 = arith.index_cast %4 : i32 to index
    %23 = vector.load %arg2[%c0_8, %c0_9, %22] : memref<1x32x256xf32, #tpu.memory_space<vmem>>, vector<1x32x256xf32>
    %24 = vector.shape_cast %23 : vector<1x32x256xf32> to vector<32x256xf32>
    %c0_10 = arith.constant 0 : index
    %25 = memref.load %arg5[%c0_10] : memref<1xf32, #tpu.memory_space<smem>>
    %26 = vector.broadcast %25 : f32 to vector<32x256xf32>
    %27 = arith.mulf %26, %21 : vector<32x256xf32>
    %28 = arith.addf %27, %24 : vector<32x256xf32>
    %c0_11 = arith.constant 0 : index
    %c0_12 = arith.constant 0 : index
    %c0_13 = arith.constant 0 : index
    %29 = vector.load %arg6[%c0_11, %c0_12, %c0_13] : memref<1x32x256xf32, #tpu.memory_space<vmem>>, vector<1x32x256xf32>
    %30 = vector.shape_cast %29 : vector<1x32x256xf32> to vector<32x256xf32>
    %31 = vector.shape_cast %28 : vector<32x256xf32> to vector<1x32x256xf32>
    tpu.vector_store %arg6[%c0_11, %c0_12, %c0_13], %31 {strides = array<i32>} : memref<1x32x256xf32, #tpu.memory_space<vmem>>, vector<1x32x256xf32>,
    return
  }
  func.func @transform_0(%arg0: i32, %arg1: i32) -> (i32, i32, i32) {
    %c0_i32 = arith.constant 0 : i32
    %c0_i32_0 = arith.constant 0 : i32
    %c0_i32_1 = arith.constant 0 : i32
    return %arg0, %c0_i32, %c0_i32_0 : i32, i32, i32
  }
  func.func @transform_1(%arg0: i32, %arg1: i32) -> (i32, i32) {
    %c0_i32 = arith.constant 0 : i32
    %c0_i32_0 = arith.constant 0 : i32
    %c0_i32_1 = arith.constant 0 : i32
    return %c0_i32, %c0_i32_0 : i32, i32
  }
  func.func @transform_2(%arg0: i32, %arg1: i32) -> (i32, i32) {
    %c0_i32 = arith.constant 0 : i32
    %c0_i32_0 = arith.constant 0 : i32
    %c0_i32_1 = arith.constant 0 : i32
    return %c0_i32, %c0_i32_0 : i32, i32
  }
  func.func @transform_3(%arg0: i32, %arg1: i32) -> i32 {
    %c0_i32 = arith.constant 0 : i32
    %c0_i32_0 = arith.constant 0 : i32
    return %c0_i32 : i32
  }
  func.func @transform_4(%arg0: i32, %arg1: i32) -> (i32, i32, i32) {
    %c0_i32 = arith.constant 0 : i32
    %c0_i32_0 = arith.constant 0 : i32
    return %arg0, %c0_i32, %arg1 : i32, i32, i32
  }
}

</mosaic_0001>

<bundles_post_ra>
// kernel: tpu_custom_call.1
= control target key start
LH: loop header
LB: loop body
LE: loop exit
PB: predicated region body
PF: predicated region fallthrough
CT: control target
= control target key end

     0   :  { %s2586_s0 = inlined_call_operand.vmem [shape: f32[2,32,256], index: 0, kind: input, shape index: {}]   ;;  %s2587_s1 = inlined_call_operand.vmem [shape: f32[48,32], index: 1, kind: input, shape index: {}]   ;;  %s2588_s2 = inlined_call_operand.vmem [shape: f32[48,1], index: 2, kind: input, shape index: {}]   ;;  %s2589_s3 = inlined_call_operand.<no memory space> [shape: f32[1], index: 3, kind: input, shape index: {}]   ;;  %s2590_s4 = inlined_call_operand.hbm [shape: f32[2,32,256], index: 4, kind: output, shape index: {}]  }
   0x1   :  { %9 = sst [smem:[#allocation5]] %s2589_s3 }
   0x2   :  { %10 = vsyncpa [#allocation7], 0 }
   0x3   :  { %12 = vsyncpa [#allocation7 + $0x1], 0  ;;  %s1793_s17 = smov 0   ;;  %s1795_s18 = smov 0  }
   0x4   :  { %s1797_s19 = smov 0   ;;  %s1799_s20 = smov 0  }
   0x5   :  { %s1801_s21 = smov 0   ;;  %s1803_s22 = smov 0  }
   0x6 LB: > { %s1376_s3 = sadd.s32 4294967295, %s1760_s22   ;;  %s1377_s23 = sadd.s32 4294967294, %s1760_s22   ;;  %s1760_s22 = sphi %s1803_s22, %s18_s22   ;;  %s1756_s21 = sphi %s1801_s21, %s2655_s21   ;;  %s1752_s20 = sphi %s1799_s20, %s2654_s20   ;;  %s1748_s19 = sphi %s1797_s19, %s2653_s19   ;;  %s1744_s18 = sphi %s1795_s18, %s2652_s18   ;;  %s1740_s17 = sphi %s1793_s17, %s2651_s17  }
   0x7   : > { %s30_s24 = sadd.s32 1, %s1756_s21  ;;  %s128_s25 = sadd.s32 1, %s1748_s19 }
   0x8   : > { %p32_p0 = scmp.ge.s32.totalorder %s30_s24, 2  ;;  %p138_p1 = scmp.ne.s32.totalorder %s1748_s19, %s1744_s18 }
   0x9   : > { %p139_p2 = scmp.eq.s32.totalorder %s1376_s3, 1  ;;  %p144_p3 = scmp.ne.s32.totalorder %s1744_s18, %s1740_s17 }
   0xa   : > { %s2657_s24 = smov (%p32_p0, %s30_s24), 0  ;;  %p145_p5 = scmp.eq.s32.totalorder %s1377_s23, 1 }
   0xb   : > { %p1833_p4 = por %p139_p2, %p138_p1  ;;  %s123_s27 = ssub.s32 %s1756_s21, %s2657_s24 }
   0xc   : > { %p1380_p6 = scmp.ge.s32.totalorder %s1760_s22, 1  ;;  %p126_p7 = scmp.eq.s32.totalorder %s123_s27, 0 }
   0xd   : > { %p1840_p8 = por %p145_p5, %p144_p3  ;;  %p180_p9 = scmp.lt.s32.totalorder %s1760_s22, 3 }
   0xe   : > { %s1846_s29 = scalar_select %p126_p7, %s1748_s19, %s128_s25  }
   0xf   : > { %p181_p10 = pnand %p1380_p6, %p180_p9 }
  0x11   : > { %184 = sbr.rel (%p181_p10) target bundleno = 1001 (0x3e9), region = 36 }
  0x16   : > { %p206_p11 = scmp.lt.s32.totalorder %s1752_s20, 1  ;;  %v231_v0 = vld [vmem:[%s2588_s2 + $0x8] sm:$0xff]  ;;  %v1762_v1 = vmov 0   ;;  %v230_v6 = vld [vmem:[%s2588_s2] sm:$0xff]  ;;  %vm266_vm0 = vcmask 261120   ;;  %v232_v14 = vld [vmem:[%s2588_s2 + $0x10] sm:$0xff] }
  0x17   : > { %1548 = vset.pattern.permute.xlu0 %v1762_v1  ;;  %1549 = vset.pattern.permute.xlu2 %v1762_v1  ;;  %v224_v11 = vld [vmem:[%s2587_s1] sm:$0xff]  ;;  %v225_v13 = vld [vmem:[%s2587_s1 + $0x8] sm:$0xff]  ;;  %v226_v15 = vld [vmem:[%s2587_s1 + $0x10] sm:$0xff]  ;;  %vm440_vm1 = vcmask 64512   ;;  %s1255_s3 = sld [smem:[#allocation5]]  ;;  %s203_s23 = sand.u32 1, %s1744_s18  }
  0x18   : > { %s207_s6 = scalar_select %p206_p11, %s1752_s20, 1  ;;  %243 = vperm.xlu0 %1548, %v231_v0   ;;  %v234_v12 = vld [vmem:[%s2588_s2 + $0x20] sm:$0xff]  ;;  %248 = vperm.xlu2 %1549, %v232_v14   ;;  %v233_v16 = vld [vmem:[%s2588_s2 + $0x18] sm:$0xff]  ;;  %v235_v18 = vld [vmem:[%s2588_s2 + $0x28] sm:$0xff] }
  0x19   : > { %v227_v17 = vld [vmem:[%s2587_s1 + $0x18] sm:$0xff]  ;;  %v228_v19 = vld [vmem:[%s2587_s1 + $0x20] sm:$0xff]  ;;  %v229_v20 = vld [vmem:[%s2587_s1 + $0x28] sm:$0xff]  ;;  %s1381_s25 = sshll.u32 %s203_s23, 6  ;;  %s1486_s30 = sshll.u32 %s1752_s20, 6 }
  0x1a   : > { %s1481_s7 = sshll.u32 %s207_s6, 6  ;;  %s2523_s27 = scalar_lea.vmem [#allocation6], %s1381_s25 }
  0x1b   : > { %s1856_s10 = scalar_lea.vmem %s2586_s0, %s1481_s7  ;;  %s1295_s7 = scalar_lea.hbm %s2590_s4, %s1486_s30 }
  0x1c   : > { %v222_v2 = vld [vmem:[%s1856_s10 + $0x30] sm:$0xff]  ;;  %v223_v3 = vld [vmem:[%s1856_s10 + $0x38] sm:$0xff]  ;;  %v220_v4 = vld [vmem:[%s1856_s10 + $0x20] sm:$0xff]  ;;  %s1296_s8 = sshll.u32 %s2523_s27, 4  ;;  %s1298_s9 = sshll.u32 %s1295_s7, 4  ;;  %s1297_s8 = int_to_ptr.vmem [resolvable:$true] %s1296_s8  ;;  %s1299_s9 = int_to_ptr.hbm [resolvable:$true] %s1298_s9 }
  0x1d   : > { %297 = vmatpush.msra.mxu0 %v222_v2  ;;  %332 = vmatpush.msra.mxu1 %v223_v3  ;;  %v221_v5 = vld [vmem:[%s1856_s10 + $0x28] sm:$0xff]  ;;  %v218_v7 = vld [vmem:[%s1856_s10 + $0x10] sm:$0xff]  ;;  %v219_v8 = vld [vmem:[%s1856_s10 + $0x18] sm:$0xff]  ;;  %s1282_s20 = scalar_lea.sflag [#allocation7], %s203_s23  ;;  %s1696_s11 = sshra.s32 %s1299_s9, 4  ;;  %s1697_s11 = int_to_ptr.hbm [resolvable:$true] %s1696_s11 }
  0x1e   : > { %v216_v9 = vld [vmem:[%s1856_s10] sm:$0xff]  ;;  %v217_v10 = vld [vmem:[%s1856_s10 + $0x8] sm:$0xff]  ;;  %s1698_s12 = scalar_lea.hbm %s1697_s11, 64  ;;  %p1703_p1 = scmp.lt.s32.totalorder %s1697_s11, %s2590_s4 }
  0x1f   : > { %298 = vmatpush.msra.mxu0 %v220_v4  ;;  %333 = vmatpush.msra.mxu1 %v221_v5  ;;  %p1699_p12 = scmp.ne.s32.totalorder %s1697_s11, %s1698_s12 }
  0x20   : > { %238 = vperm.xlu0 %1548, %v230_v6   ;;  %253 = vperm.xlu2 %1549, %v233_v16  }
  0x21   : > { %299 = vmatpush.msra.mxu0 %v218_v7  ;;  %334 = vmatpush.msra.mxu1 %v219_v8  ;;  %p1700_p13 = pnand %p1699_p12, %p1833_p4 }
  0x23   : > { %300 = vmatpush.msra.mxu0 %v216_v9  ;;  %335 = vmatpush.msra.mxu1 %v217_v10  ;;  %p1701_p0 = pneg %p1700_p13 }
  0x24   : > { %1384 = vmatmul.msk.f32.vlgmr.msra.gmra.mxu0 %vm266_vm0, %v224_v11  ;;  %1390 = vmatmul.msk.f32.vlgmr.msra.gmra.mxu1 %vm266_vm0, %v224_v11 }
  0x28   : > { %258 = vperm.xlu0 %1548, %v234_v12   ;;  %263 = vperm.xlu2 %1549, %v235_v18  }
  0x2c   : > { %1385 = vmatmul.msk.f32.gmra.mxu0 %vm266_vm0, %v225_v13  ;;  %1391 = vmatmul.msk.f32.gmra.mxu1 %vm266_vm0, %v225_v13 }
  0x34   : > { %1386 = vmatmul.msk.f32.gmra.mxu0 %vm266_vm0, %v226_v15  ;;  %1392 = vmatmul.msk.f32.gmra.mxu1 %vm266_vm0, %v226_v15 }
  0x3c   : > { %1387 = vmatmul.msk.f32.gmra.mxu0 %vm266_vm0, %v227_v17  ;;  %1393 = vmatmul.msk.f32.gmra.mxu1 %vm266_vm0, %v227_v17 }
  0x44   : > { %1388 = vmatmul.msk.f32.gmra.mxu0 %vm266_vm0, %v228_v19  ;;  %1394 = vmatmul.msk.f32.gmra.mxu1 %vm266_vm0, %v228_v19 }
  0x4c   : > { %1389 = vmatmul.msk.f32.gmra.mxu0 %vm266_vm0, %v229_v20  ;;  %1395 = vmatmul.msk.f32.gmra.mxu1 %vm266_vm0, %v229_v20 }
  0x72   : > { %v249_v31 = vpop.permute.xlu2 %248 }
  0x7a   : > { %v254_v37 = vpop.permute.xlu2 %253 }
  0x82   : > { %v264_v49 = vpop.permute.xlu2 %263 }
  0x8a   : > { %v244_v21 = vpop.permute.xlu0 %243 }
  0x92   : > { %v239_v22 = vpop.permute.xlu0 %238 }
  0x9a   : > { %v259_v43 = vpop.permute.xlu0 %258 }
  0xa1   : > { %v302_v23 = vpop.f32.mrf.mxu0  ;;  %v337_v24 = vpop.f32.mrf.mxu1 }
  0xa2   : > { %v303_v25 = vadd.f32 %v302_v23, %v239_v22  ;;  %v338_v26 = vadd.f32 %v337_v24, %v239_v22 }
  0xa4   : > { %552 = vmatpush.msrb.mxu0 %v303_v25  ;;  %1487 = vmatpush.msra.mxu2 %v303_v25 }
  0xa5   : > { %665 = vmatpush.msrb.mxu1 %v338_v26  ;;  %1488 = vmatpush.msra.mxu3 %v338_v26 }
  0xa9   : > { %v305_v27 = vpop.f32.mrf.mxu0  ;;  %v340_v28 = vpop.f32.mrf.mxu1 }
  0xaa   : > { %v341_v29 = vadd.f32 %v340_v28, %v244_v21  ;;  %v306_v30 = vadd.f32 %v305_v27, %v244_v21 }
  0xac   : > { %376 = vxpose.xlu1.b32.start.end [1/1] (short) %v306_v30, 128 }
  0xb1   : > { %v308_v32 = vpop.f32.mrf.mxu0  ;;  %v343_v33 = vpop.f32.mrf.mxu1 }
  0xb2   : > { %v309_v34 = vadd.f32 %v308_v32, %v249_v31  ;;  %v344_v35 = vadd.f32 %v343_v33, %v249_v31 }
  0xb4   : > { %v359_v36 = vpack.c.bf16 %v344_v35, %v309_v34 }
  0xb6   : > { %363 = vst [vmem:[#allocation4] sm:$0xff] %v359_v36 }
  0xb9   : > { %v311_v38 = vpop.f32.mrf.mxu0  ;;  %v346_v39 = vpop.f32.mrf.mxu1 }
  0xba   : > { %v312_v40 = vadd.f32 %v311_v38, %v254_v37  ;;  %v347_v41 = vadd.f32 %v346_v39, %v254_v37 }
  0xbc   : > { %v360_v42 = vpack.c.bf16 %v347_v41, %v312_v40 }
  0xbe   : > { %364 = vst [vmem:[#allocation4 + $0x8] sm:$0xff] %v360_v42 }
  0xc1   : > { %v314_v44 = vpop.f32.mrf.mxu0  ;;  %v349_v45 = vpop.f32.mrf.mxu1 }
  0xc2   : > { %v315_v46 = vadd.f32 %v314_v44, %v259_v43  ;;  %v350_v47 = vadd.f32 %v349_v45, %v259_v43 }
  0xc4   : > { %v361_v48 = vpack.c.bf16 %v350_v47, %v315_v46 }
  0xc6   : > { %365 = vst [vmem:[#allocation4 + $0x10] sm:$0xff] %v361_v48 }
  0xc9   : > { %v317_v50 = vpop.f32.mrf.mxu0  ;;  %v352_v51 = vpop.f32.mrf.mxu1 }
  0xca   : > { %v318_v52 = vadd.f32 %v317_v50, %v264_v49  ;;  %v353_v53 = vadd.f32 %v352_v51, %v264_v49 }
  0xcc   : > { %v362_v54 = vpack.c.bf16 %v353_v53, %v318_v52 }
  0xce   : > { %366 = vst [vmem:[#allocation4 + $0x18] sm:$0xff] %v362_v54 }
 0x12c   : > { %408 = vxpose.xlu1.b32.start.end [1/1] (short) %v341_v29, 128 }
 0x150   : > { %v392_v55 = vpop.trf.xlu1 }
 0x151   : > { %1396 = vmatmul.msk.f32.vlgmr.msrb.gmra.mxu0 %vm440_vm1, %v392_v55  ;;  %1428 = vmatmul.msk.f32.vlgmr.msrb.gmra.mxu1 %vm440_vm1, %v392_v55 }
 0x158   : > { %v393_v56 = vpop.trf.xlu1 }
 0x159   : > { %1397 = vmatmul.msk.f32.gmra.mxu0 %vm440_vm1, %v393_v56  ;;  %1429 = vmatmul.msk.f32.gmra.mxu1 %vm440_vm1, %v393_v56 }
 0x160   : > { %v394_v57 = vpop.trf.xlu1 }
 0x161   : > { %1398 = vmatmul.msk.f32.gmra.mxu0 %vm440_vm1, %v394_v57  ;;  %1430 = vmatmul.msk.f32.gmra.mxu1 %vm440_vm1, %v394_v57 }
 0x168   : > { %v395_v58 = vpop.trf.xlu1 }
 0x169   : > { %1399 = vmatmul.msk.f32.gmra.mxu0 %vm440_vm1, %v395_v58  ;;  %1431 = vmatmul.msk.f32.gmra.mxu1 %vm440_vm1, %v395_v58 }
 0x170   : > { %v396_v59 = vpop.trf.xlu1 }
 0x171   : > { %1400 = vmatmul.msk.f32.gmra.mxu0 %vm440_vm1, %v396_v59  ;;  %1432 = vmatmul.msk.f32.gmra.mxu1 %vm440_vm1, %v396_v59 }
 0x178   : > { %v397_v60 = vpop.trf.xlu1 }
 0x179   : > { %1401 = vmatmul.msk.f32.gmra.mxu0 %vm440_vm1, %v397_v60  ;;  %1433 = vmatmul.msk.f32.gmra.mxu1 %vm440_vm1, %v397_v60 }
 0x180   : > { %v398_v61 = vpop.trf.xlu1 }
 0x181   : > { %1402 = vmatmul.msk.f32.gmra.mxu0 %vm440_vm1, %v398_v61  ;;  %1434 = vmatmul.msk.f32.gmra.mxu1 %vm440_vm1, %v398_v61 }
 0x188   : > { %v399_v62 = vpop.trf.xlu1 }
 0x189   : > { %1403 = vmatmul.msk.f32.gmra.mxu0 %vm440_vm1, %v399_v62  ;;  %1435 = vmatmul.msk.f32.gmra.mxu1 %vm440_vm1, %v399_v62 }
 0x190   : > { %v400_v63 = vpop.trf.xlu1 }
 0x191   : > { %1404 = vmatmul.msk.f32.vlgmr.msra.gmra.mxu2 %vm440_vm1, %v400_v63  ;;  %1436 = vmatmul.msk.f32.vlgmr.msra.gmra.mxu3 %vm440_vm1, %v400_v63 }
 0x198   : > { %v401_v0 = vpop.trf.xlu1 }
 0x199   : > { %1405 = vmatmul.msk.f32.gmra.mxu2 %vm440_vm1, %v401_v0  ;;  %1437 = vmatmul.msk.f32.gmra.mxu3 %vm440_vm1, %v401_v0 }
 0x1a0   : > { %v402_v1 = vpop.trf.xlu1 }
 0x1a1   : > { %1406 = vmatmul.msk.f32.gmra.mxu2 %vm440_vm1, %v402_v1  ;;  %1438 = vmatmul.msk.f32.gmra.mxu3 %vm440_vm1, %v402_v1 }
 0x1a8   : > { %v403_v2 = vpop.trf.xlu1 }
 0x1a9   : > { %1407 = vmatmul.msk.f32.gmra.mxu2 %vm440_vm1, %v403_v2  ;;  %1439 = vmatmul.msk.f32.gmra.mxu3 %vm440_vm1, %v403_v2 }
 0x1b0   : > { %v404_v3 = vpop.trf.xlu1 }
 0x1b1   : > { %1408 = vmatmul.msk.f32.gmra.mxu2 %vm440_vm1, %v404_v3  ;;  %1440 = vmatmul.msk.f32.gmra.mxu3 %vm440_vm1, %v404_v3 }
 0x1b8   : > { %v405_v4 = vpop.trf.xlu1 }
 0x1b9   : > { %1409 = vmatmul.msk.f32.gmra.mxu2 %vm440_vm1, %v405_v4  ;;  %1441 = vmatmul.msk.f32.gmra.mxu3 %vm440_vm1, %v405_v4 }
 0x1c0   : > { %v406_v5 = vpop.trf.xlu1 }
 0x1c1   : > { %1410 = vmatmul.msk.f32.gmra.mxu2 %vm440_vm1, %v406_v5  ;;  %1442 = vmatmul.msk.f32.gmra.mxu3 %vm440_vm1, %v406_v5 }
 0x1c8   : > { %v407_v6 = vpop.trf.xlu1 }
 0x1c9   : > { %1411 = vmatmul.msk.f32.gmra.mxu2 %vm440_vm1, %v407_v6  ;;  %1443 = vmatmul.msk.f32.gmra.mxu3 %vm440_vm1, %v407_v6 }
 0x1ce   : > { %v2019_v45 = vpop.f32.mrf.mxu0  ;;  %v2035_v53 = vpop.f32.mrf.mxu1 }
 0x1d0   : > { %v424_v7 = vpop.trf.xlu1 }
 0x1d1   : > { %1412 = vmatmul.msk.f32.gmra.mxu2 %vm440_vm1, %v424_v7  ;;  %1444 = vmatmul.msk.f32.gmra.mxu3 %vm440_vm1, %v424_v7 }
 0x1d6   : > { %v2029_v50 = vpop.f32.mrf.mxu0  ;;  %v2043_v57 = vpop.f32.mrf.mxu1 }
 0x1d7   : > { %2620 = vst [vmem:[#allocation17_spill] sm:$0xff] %v2043_v57 }
 0x1d8   : > { %v425_v8 = vpop.trf.xlu1 }
 0x1d9   : > { %1413 = vmatmul.msk.f32.gmra.mxu2 %vm440_vm1, %v425_v8  ;;  %1445 = vmatmul.msk.f32.gmra.mxu3 %vm440_vm1, %v425_v8 }
 0x1de   : > { %v2037_v54 = vpop.f32.mrf.mxu0  ;;  %v2051_v61 = vpop.f32.mrf.mxu1 }
 0x1df   : > { %2619 = vst [vmem:[#allocation16_spill] sm:$0xff] %v2037_v54 }
 0x1e0   : > { %v426_v9 = vpop.trf.xlu1  ;;  %2623 = vst [vmem:[#allocation20_spill] sm:$0xff] %v2051_v61 }
 0x1e1   : > { %1414 = vmatmul.msk.f32.gmra.mxu2 %vm440_vm1, %v426_v9  ;;  %1446 = vmatmul.msk.f32.gmra.mxu3 %vm440_vm1, %v426_v9 }
 0x1e6   : > { %v2045_v58 = vpop.f32.mrf.mxu0  ;;  %v2059_v1 = vpop.f32.mrf.mxu1 }
 0x1e7   : > { %2621 = vst [vmem:[#allocation18_spill] sm:$0xff] %v2045_v58 }
 0x1e8   : > { %v427_v10 = vpop.trf.xlu1  ;;  %2624 = vst [vmem:[#allocation21_spill] sm:$0xff] %v2059_v1 }
 0x1e9   : > { %1415 = vmatmul.msk.f32.gmra.mxu2 %vm440_vm1, %v427_v10  ;;  %1447 = vmatmul.msk.f32.gmra.mxu3 %vm440_vm1, %v427_v10 }
 0x1ee   : > { %v2053_v62 = vpop.f32.mrf.mxu0  ;;  %v2069_v6 = vpop.f32.mrf.mxu1 }
 0x1f0   : > { %v428_v11 = vpop.trf.xlu1 }
 0x1f1   : > { %1416 = vmatmul.msk.f32.gmra.mxu2 %vm440_vm1, %v428_v11  ;;  %1448 = vmatmul.msk.f32.gmra.mxu3 %vm440_vm1, %v428_v11  ;;  %v763_v11 = vmax.f32 %v2019_v45, %v2037_v54 }
 0x1f6   : > { %v2063_v3 = vpop.f32.mrf.mxu0  ;;  %v2077_v10 = vpop.f32.mrf.mxu1 }
 0x1f7   : > { %2625 = vst [vmem:[#allocation22_spill] sm:$0xff] %v2063_v3 }
 0x1f8   : > { %v429_v12 = vpop.trf.xlu1 }
 0x1f9   : > { %1417 = vmatmul.msk.f32.gmra.mxu2 %vm440_vm1, %v429_v12  ;;  %1449 = vmatmul.msk.f32.gmra.mxu3 %vm440_vm1, %v429_v12  ;;  %v764_v12 = vmax.f32 %v2029_v50, %v2045_v58 }
 0x1fe   : > { %v2071_v7 = vpop.f32.mrf.mxu0  ;;  %v2097_v54 = vpop.f32.mrf.mxu1 }
 0x200   : > { %v430_v13 = vpop.trf.xlu1 }
 0x201   : > { %1418 = vmatmul.msk.f32.gmra.mxu2 %vm440_vm1, %v430_v13  ;;  %1450 = vmatmul.msk.f32.gmra.mxu3 %vm440_vm1, %v430_v13 }
 0x206   : > { %v2083_v13 = vpop.f32.mrf.mxu0 }
 0x207   : > { %2627 = vst [vmem:[#allocation24_spill] sm:$0xff] %v2083_v13 }
 0x208   : > { %v431_v14 = vpop.trf.xlu1 }
 0x209   : > { %1419 = vmatmul.msk.f32.gmra.mxu2 %vm440_vm1, %v431_v14  ;;  %1451 = vmatmul.msk.f32.gmra.mxu3 %vm440_vm1, %v431_v14  ;;  %v765_v14 = vmax.f32 %v763_v11, %v2053_v62 }
 0x210   : > { %v432_v15 = vpop.trf.xlu1 }
 0x211   : > { %1420 = vmatmul.msk.f32.gmra.mxu2 %vm440_vm1, %v432_v15  ;;  %1452 = vmatmul.msk.f32.gmra.mxu3 %vm440_vm1, %v432_v15  ;;  %v766_v15 = vmax.f32 %v764_v12, %v2063_v3 }
 0x214   : > { %v1961_v16 = vpop.f32.mrf.mxu2  ;;  %v1963_v17 = vpop.f32.mrf.mxu3 }
 0x218   : > { %v433_v18 = vpop.trf.xlu1 }
 0x219   : > { %1421 = vmatmul.msk.f32.gmra.mxu2 %vm440_vm1, %v433_v18  ;;  %1453 = vmatmul.msk.f32.gmra.mxu3 %vm440_vm1, %v433_v18 }
 0x21c   : > { %v1967_v19 = vpop.f32.mrf.mxu2  ;;  %v1969_v20 = vpop.f32.mrf.mxu3 }
 0x21d   : > { %2612 = vst [vmem:[#allocation9_spill] sm:$0xff] %v1969_v20 }
 0x220   : > { %v434_v21 = vpop.trf.xlu1 }
 0x221   : > { %1422 = vmatmul.msk.f32.gmra.mxu2 %vm440_vm1, %v434_v21  ;;  %1454 = vmatmul.msk.f32.gmra.mxu3 %vm440_vm1, %v434_v21 }
 0x224   : > { %v1973_v22 = vpop.f32.mrf.mxu2  ;;  %v1975_v23 = vpop.f32.mrf.mxu3 }
 0x228   : > { %v435_v24 = vpop.trf.xlu1 }
 0x229   : > { %1423 = vmatmul.msk.f32.gmra.mxu2 %vm440_vm1, %v435_v24  ;;  %1455 = vmatmul.msk.f32.gmra.mxu3 %vm440_vm1, %v435_v24  ;;  %v767_v24 = vmax.f32 %v765_v14, %v2071_v7 }
 0x22c   : > { %v1979_v25 = vpop.f32.mrf.mxu2  ;;  %v1981_v26 = vpop.f32.mrf.mxu3 }
 0x22d   : > { %2613 = vst [vmem:[#allocation10_spill] sm:$0xff] %v1981_v26 }
 0x230   : > { %v436_v27 = vpop.trf.xlu1 }
 0x231   : > { %1424 = vmatmul.msk.f32.gmra.mxu2 %vm440_vm1, %v436_v27  ;;  %1456 = vmatmul.msk.f32.gmra.mxu3 %vm440_vm1, %v436_v27  ;;  %v768_v27 = vmax.f32 %v766_v15, %v2083_v13 }
 0x234   : > { %v1985_v28 = vpop.f32.mrf.mxu2  ;;  %v1987_v29 = vpop.f32.mrf.mxu3 }
 0x238   : > { %v437_v30 = vpop.trf.xlu1 }
 0x239   : > { %1425 = vmatmul.msk.f32.gmra.mxu2 %vm440_vm1, %v437_v30  ;;  %1457 = vmatmul.msk.f32.gmra.mxu3 %vm440_vm1, %v437_v30  ;;  %v769_v30 = vmax.f32 %v767_v24, %v1961_v16 }
 0x23c   : > { %v1991_v31 = vpop.f32.mrf.mxu2  ;;  %v1993_v32 = vpop.f32.mrf.mxu3 }
 0x23d   : > { %2614 = vst [vmem:[#allocation11_spill] sm:$0xff] %v1991_v31 }
 0x23e   : > { %2615 = vst [vmem:[#allocation12_spill] sm:$0xff] %v1993_v32 }
 0x240   : > { %v438_v33 = vpop.trf.xlu1 }
 0x241   : > { %1426 = vmatmul.msk.f32.gmra.mxu2 %vm440_vm1, %v438_v33  ;;  %1458 = vmatmul.msk.f32.gmra.mxu3 %vm440_vm1, %v438_v33  ;;  %v770_v33 = vmax.f32 %v768_v27, %v1967_v19 }
 0x243   : > { %v772_v58 = vmax.f32 %v770_v33, %v1979_v25 }
 0x244   : > { %v1997_v34 = vpop.f32.mrf.mxu2  ;;  %v1999_v35 = vpop.f32.mrf.mxu3 }
 0x245   : > { %v774_v12 = vmax.f32 %v772_v58, %v1991_v31 }
 0x248   : > { %v439_v36 = vpop.trf.xlu1 }
 0x249   : > { %1427 = vmatmul.msk.f32.gmra.mxu2 %vm440_vm1, %v439_v36  ;;  %1459 = vmatmul.msk.f32.gmra.mxu3 %vm440_vm1, %v439_v36  ;;  %v771_v36 = vmax.f32 %v769_v30, %v1973_v22 }
 0x24b   : > { %v773_v11 = vmax.f32 %v771_v36, %v1985_v28  ;;  %v801_v36 = vmax.f32 %v2043_v57, %v2059_v1 }
 0x24c   : > { %v2003_v37 = vpop.f32.mrf.mxu2  ;;  %v2005_v38 = vpop.f32.mrf.mxu3 }
 0x24d   : > { %v775_v14 = vmax.f32 %v773_v11, %v1997_v34  ;;  %v776_v15 = vmax.f32 %v774_v12, %v2003_v37  ;;  %v2115_v11 = vpop.f32.mrf.mxu1 }
 0x24e   : > { %2628 = vst [vmem:[#allocation25_spill] sm:$0xff] %v2115_v11 }
 0x254   : > { %v2007_v39 = vpop.f32.mrf.mxu2  ;;  %v2009_v40 = vpop.f32.mrf.mxu3 }
 0x255   : > { %v777_v24 = vmax.f32 %v775_v14, %v2007_v39  ;;  %v800_v14 = vmax.f32 %v2035_v53, %v2051_v61 }
 0x25c   : > { %v2011_v41 = vpop.f32.mrf.mxu2  ;;  %v2013_v42 = vpop.f32.mrf.mxu3 }
 0x25d   : > { %2616 = vst [vmem:[#allocation13_spill] sm:$0xff] %v2013_v42  ;;  %v778_v27 = vmax.f32 %v776_v15, %v2011_v41  ;;  %v803_v15 = vmax.f32 %v801_v36, %v2077_v10 }
 0x25f   : > { %v805_v1 = vmax.f32 %v803_v15, %v2115_v11 }
 0x261   : > { %v807_v61 = vmax.f32 %v805_v1, %v1969_v20 }
 0x264   : > { %v2015_v43 = vpop.f32.mrf.mxu2  ;;  %v2017_v44 = vpop.f32.mrf.mxu3 }
 0x265   : > { %v779_v30 = vmax.f32 %v777_v24, %v2015_v43 }
 0x26c   : > { %v2021_v46 = vpop.f32.mrf.mxu2  ;;  %v2023_v47 = vpop.f32.mrf.mxu3 }
 0x26d   : > { %2617 = vst [vmem:[#allocation14_spill] sm:$0xff] %v2021_v46  ;;  %v780_v33 = vmax.f32 %v778_v27, %v2021_v46  ;;  %v802_v46 = vmax.f32 %v800_v14, %v2069_v6  ;;  %v809_v14 = vmax.f32 %v807_v61, %v1981_v26 }
 0x274   : > { %v2025_v48 = vpop.f32.mrf.mxu2  ;;  %v2027_v49 = vpop.f32.mrf.mxu3 }
 0x275   : > { %v781_v58 = vmax.f32 %v779_v30, %v2025_v48 }
 0x27c   : > { %v2031_v51 = vpop.f32.mrf.mxu2  ;;  %v2033_v52 = vpop.f32.mrf.mxu3 }
 0x27d   : > { %2618 = vst [vmem:[#allocation15_spill] sm:$0xff] %v2031_v51  ;;  %v782_v31 = vmax.f32 %v780_v33, %v2031_v51  ;;  %v804_v51 = vmax.f32 %v802_v46, %v2097_v54  ;;  %v811_v46 = vmax.f32 %v809_v14, %v1993_v32 }
 0x284   : > { %v2039_v55 = vpop.f32.mrf.mxu2  ;;  %v2041_v56 = vpop.f32.mrf.mxu3 }
 0x285   : > { %v783_v24 = vmax.f32 %v781_v58, %v2039_v55 }
 0x28c   : > { %v2047_v59 = vpop.f32.mrf.mxu2  ;;  %v2049_v60 = vpop.f32.mrf.mxu3 }
 0x28d   : > { %2622 = vst [vmem:[#allocation19_spill] sm:$0xff] %v2049_v60  ;;  %v784_v27 = vmax.f32 %v782_v31, %v2047_v59  ;;  %v806_v31 = vmax.f32 %v804_v51, %v1963_v17  ;;  %v813_v51 = vmax.f32 %v811_v46, %v2005_v38 }
 0x294   : > { %v2055_v63 = vpop.f32.mrf.mxu2  ;;  %v2057_v0 = vpop.f32.mrf.mxu3 }
 0x295   : > { %v785_v30 = vmax.f32 %v783_v24, %v2055_v63 }
 0x29c   : > { %v2061_v2 = vpop.f32.mrf.mxu2  ;;  %v2065_v4 = vpop.f32.mrf.mxu3 }
 0x29d   : > { %2626 = vst [vmem:[#allocation23_spill] sm:$0xff] %v2065_v4  ;;  %v786_v33 = vmax.f32 %v784_v27, %v2061_v2  ;;  %v808_v27 = vmax.f32 %v806_v31, %v1975_v23 }
 0x2a4   : > { %v2067_v5 = vpop.f32.mrf.mxu2  ;;  %v2073_v8 = vpop.f32.mrf.mxu3 }
 0x2a5   : > { %v787_v36 = vmax.f32 %v785_v30, %v2067_v5 }
 0x2ac   : > { %v2075_v9 = vpop.f32.mrf.mxu2  ;;  %v2087_v18 = vpop.f32.mrf.mxu3 }
 0x2ad   : > { %v788_v58 = vmax.f32 %v786_v33, %v2075_v9  ;;  %v810_v33 = vmax.f32 %v808_v27, %v1987_v29 }
 0x2af   : > { %v812_v61 = vmax.f32 %v810_v33, %v1999_v35 }
 0x2b1   : > { %v814_v31 = vmax.f32 %v812_v61, %v2009_v40 }
 0x2b4   : > { %v2089_v21 = vpop.f32.mrf.mxu2  ;;  %v2105_v13 = vpop.f32.mrf.mxu3 }
 0x2b5   : > { %v789_v15 = vmax.f32 %v787_v36, %v2089_v21  ;;  %v815_v36 = vmax.f32 %v813_v51, %v2013_v42 }
 0x2b7   : > { %v817_v14 = vmax.f32 %v815_v36, %v2023_v47 }
 0x2bc   : > { %v2101_v3 = vpop.f32.mrf.mxu2  ;;  %v2128_v57 = vpop.f32.mrf.mxu3 }
 0x2bd   : > { %v790_v24 = vmax.f32 %v788_v58, %v2101_v3 }
 0x2c4   : > { %v2117_v12 = vpop.f32.mrf.mxu2  ;;  %v2148_v26 = vpop.f32.mrf.mxu3 }
 0x2c5   : > { %v791_v1 = vmax.f32 %v789_v15, %v2117_v12  ;;  %v816_v15 = vmax.f32 %v814_v31, %v2017_v44 }
 0x2c7   : > { %v818_v46 = vmax.f32 %v816_v15, %v2027_v49 }
 0x2c9   : > { %v820_v33 = vmax.f32 %v818_v46, %v2041_v56 }
 0x2cb   : > { %v822_v61 = vmax.f32 %v820_v33, %v2057_v0 }
 0x2cc   : > { %v2138_v11 = vpop.f32.mrf.mxu2 }
 0x2cd   : > { %v792_v30 = vmax.f32 %v790_v24, %v2138_v11  ;;  %v819_v24 = vmax.f32 %v817_v14, %v2033_v52 }
 0x2cf   : > { %v793_v20 = vmax.f32 %v791_v1, %v792_v30  ;;  %v821_v1 = vmax.f32 %v819_v24, %v2049_v60 }
 0x2d1   : > { %v794_v58 = vrot.slane %v793_v20, 4  ;;  %v823_v51 = vmax.f32 %v821_v1, %v2065_v4  ;;  %v2629_v1 = vld [vmem:[#allocation16_spill] sm:$0xff] }
 0x2d3   : > { %v795_v32 = vmax.f32 %v793_v20, %v794_v58  ;;  %v825_v36 = vmax.f32 %v823_v51, %v2087_v18  ;;  %v2160_v20 = vpop.f32.mrf.mxu3  ;;  %v824_v58 = vmax.f32 %v822_v61, %v2073_v8  ;;  %v2630_v61 = vld [vmem:[#allocation18_spill] sm:$0xff] }
 0x2d5   : > { %v796_v27 = vrot.slane %v795_v32, 2  ;;  %v827_v31 = vmax.f32 %v825_v36, %v2128_v57  ;;  %v826_v15 = vmax.f32 %v824_v58, %v2105_v13 }
 0x2d7   : > { %v797_v30 = vmax.f32 %v795_v32, %v796_v27  ;;  %v829_v32 = vmax.f32 %v827_v31, %v2160_v20  ;;  %v828_v24 = vmax.f32 %v826_v15, %v2148_v26 }
 0x2d9   : > { %v798_v42 = vrot.slane %v797_v30, 1  ;;  %v830_v51 = vmax.f32 %v828_v24, %v829_v32 }
 0x2db   : > { %v2164_v14 = vmax.f32 %v797_v30, %v798_v42  ;;  %v831_v15 = vrot.slane %v830_v51, 4 }
 0x2dd   : > { %v837_v27 = vsub.f32 %v2019_v45, %v2164_v14  ;;  %v839_v46 = vsub.f32 %v2029_v50, %v2164_v14  ;;  %v841_v33 = vsub.f32 %v2629_v1, %v2164_v14  ;;  %v843_v42 = vsub.f32 %v2630_v61, %v2164_v14  ;;  %v2631_v45 = vld [vmem:[#allocation22_spill] sm:$0xff] }
 0x2de   : > { %v845_v58 = vsub.f32 %v2053_v62, %v2164_v14  ;;  %v847_v60 = vsub.f32 %v2631_v45, %v2164_v14  ;;  %v849_v1 = vsub.f32 %v2071_v7, %v2164_v14  ;;  %v832_v24 = vmax.f32 %v830_v51, %v831_v15 }
 0x2df   : > { %v901_v30 = vmul.f32 1.442695, %v837_v27  ;;  %v905_v36 = vmul.f32 1.442695, %v839_v46  ;;  %v909_v31 = vmul.f32 1.442695, %v841_v33  ;;  %v853_v33 = vsub.f32 %v1961_v16, %v2164_v14 }
 0x2e0   : > { %v913_v50 = vmul.f32 1.442695, %v843_v42  ;;  %v917_v32 = vmul.f32 1.442695, %v845_v58  ;;  %v2632_v27 = vld [vmem:[#allocation24_spill] sm:$0xff]  ;;  %v855_v42 = vsub.f32 %v1967_v19, %v2164_v14  ;;  %v857_v51 = vsub.f32 %v1973_v22, %v2164_v14  ;;  %v2635_v22 = vld [vmem:[#allocation11_spill] sm:$0xff] }
 0x2e1   : > { %1550 = vpow2.f32 %v901_v30  ;;  %v851_v46 = vsub.f32 %v2632_v27, %v2164_v14  ;;  %v921_v61 = vmul.f32 1.442695, %v847_v60  ;;  %v925_v7 = vmul.f32 1.442695, %v849_v1 }
 0x2e2   : > { %1552 = vpow2.f32 %v905_v36  ;;  %v833_v58 = vrot.slane %v832_v24, 2  ;;  %v861_v15 = vsub.f32 %v1985_v28, %v2164_v14  ;;  %v933_v19 = vmul.f32 1.442695, %v853_v33 }
 0x2e3   : > { %1554 = vpow2.f32 %v909_v31  ;;  %v859_v31 = vsub.f32 %v1979_v25, %v2164_v14  ;;  %v929_v16 = vmul.f32 1.442695, %v851_v46  ;;  %v863_v1 = vsub.f32 %v2635_v22, %v2164_v14 }
 0x2e4   : > { %1556 = vpow2.f32 %v913_v50  ;;  %v865_v27 = vsub.f32 %v1997_v34, %v2164_v14  ;;  %v834_v46 = vmax.f32 %v832_v24, %v833_v58  ;;  %v867_v28 = vsub.f32 %v2003_v37, %v2164_v14 }
 0x2e5   : > { %1558 = vpow2.f32 %v917_v32  ;;  %v937_v32 = vmul.f32 1.442695, %v855_v42  ;;  %v945_v33 = vmul.f32 1.442695, %v859_v31  ;;  %v871_v34 = vsub.f32 %v2011_v41, %v2164_v14 }
 0x2e6   : > { %1560 = vpow2.f32 %v921_v61  ;;  %v873_v24 = vsub.f32 %v2015_v43, %v2164_v14  ;;  %v957_v37 = vmul.f32 1.442695, %v865_v27  ;;  %v835_v31 = vrot.slane %v834_v46, 1 }
 0x2e7   : > { %v2185_v62 = vpop.eup %1550  ;;  %1562 = vpow2.f32 %v925_v7  ;;  %v949_v7 = vmul.f32 1.442695, %v861_v15  ;;  %v877_v41 = vsub.f32 %v2025_v48, %v2164_v14  ;;  %v881_v27 = vsub.f32 %v2039_v55, %v2164_v14 }
 0x2e8   : > { %2633 = vst [vmem:[#allocation16_spill] sm:$0xff] %v2185_v62  ;;  %v2189_v30 = vpop.eup %1552  ;;  %1564 = vpow2.f32 %v929_v16  ;;  %v2636_v16 = vld [vmem:[#allocation14_spill] sm:$0xff]  ;;  %v897_v55 = vsub.f32 %v2117_v12, %v2164_v14 }
 0x2e9   : > { %2634 = vst [vmem:[#allocation18_spill] sm:$0xff] %v2189_v30  ;;  %v1029_v36 = vadd.f32 %v2189_v30, %v2185_v62  ;;  %v2197_v60 = vpop.eup %1554  ;;  %v941_v30 = vmul.f32 1.442695, %v857_v51  ;;  %1566 = vpow2.f32 %v933_v19  ;;  %v953_v51 = vmul.f32 1.442695, %v863_v1 }
 0x2ea   : > { %v2204_v50 = vpop.eup %1556  ;;  %1568 = vpow2.f32 %v937_v32  ;;  %v875_v15 = vsub.f32 %v2636_v16, %v2164_v14  ;;  %v961_v19 = vmul.f32 1.442695, %v867_v28  ;;  %v973_v28 = vmul.f32 1.442695, %v873_v24 }
 0x2eb   : > { %v1030_v45 = vadd.f32 %v2197_v60, %v1029_v36  ;;  %v2211_v61 = vpop.eup %1558  ;;  %v869_v36 = vsub.f32 %v2007_v39, %v2164_v14  ;;  %1570 = vpow2.f32 %v941_v30  ;;  %v2637_v30 = vld [vmem:[#allocation15_spill] sm:$0xff] }
 0x2ec   : > { %v2218_v22 = vpop.eup %1560  ;;  %1572 = vpow2.f32 %v945_v33  ;;  %v879_v32 = vsub.f32 %v2637_v30, %v2164_v14  ;;  %v2241_v33 = vmax.f32 %v834_v46, %v835_v31  ;;  %v899_v46 = vsub.f32 %v2138_v11, %v2164_v14 }
 0x2ed   : > { %v1031_v25 = vadd.f32 %v2204_v50, %v1030_v45  ;;  %v2225_v39 = vpop.eup %1562  ;;  %1574 = vpow2.f32 %v949_v7  ;;  %v965_v45 = vmul.f32 1.442695, %v869_v36  ;;  %v893_v7 = vsub.f32 %v2089_v21, %v2164_v14 }
 0x2ee   : > { %v2232_v1 = vpop.eup %1564  ;;  %1576 = vpow2.f32 %v953_v51  ;;  %v989_v21 = vmul.f32 1.442695, %v881_v27  ;;  %v838_v12 = vsub.f32 %v2035_v53, %v2241_v33  ;;  %v895_v11 = vsub.f32 %v2101_v3, %v2164_v14 }
 0x2ef   : > { %v1032_v42 = vadd.f32 %v2211_v61, %v1031_v25  ;;  %v969_v25 = vmul.f32 1.442695, %v871_v34  ;;  %1578 = vpow2.f32 %v957_v37  ;;  %v981_v34 = vmul.f32 1.442695, %v877_v41 }
 0x2f0   : > { %1580 = vpow2.f32 %v961_v19  ;;  %v985_v37 = vmul.f32 1.442695, %v879_v32  ;;  %v1013_v41 = vmul.f32 1.442695, %v893_v7  ;;  %v1021_v32 = vmul.f32 1.442695, %v897_v55 }
 0x2f1   : > { %v1033_v58 = vadd.f32 %v2218_v22, %v1032_v42  ;;  %v2238_v42 = vpop.eup %1566  ;;  %1582 = vpow2.f32 %v965_v45  ;;  %v2638_v45 = vld [vmem:[#allocation17_spill] sm:$0xff]  ;;  %v1025_v53 = vmul.f32 1.442695, %v899_v46  ;;  %v903_v3 = vmul.f32 1.442695, %v838_v12 }
 0x2f2   : > { %v2243_v36 = vpop.eup %1568  ;;  %1584 = vpow2.f32 %v969_v25  ;;  %v2640_v55 = vld [vmem:[#allocation21_spill] sm:$0xff]  ;;  %v846_v12 = vsub.f32 %v2069_v6, %v2241_v33  ;;  %v887_v6 = vsub.f32 %v2061_v2, %v2164_v14 }
 0x2f3   : > { %v1034_v43 = vadd.f32 %v2225_v39, %v1033_v58  ;;  %v977_v58 = vmul.f32 1.442695, %v875_v15  ;;  %v2247_v16 = vpop.eup %1570  ;;  %1586 = vpow2.f32 %v973_v28  ;;  %v2639_v28 = vld [vmem:[#allocation20_spill] sm:$0xff] }
 0x2f4   : > { %v2252_v51 = vpop.eup %1572 }
 0x2f5   : > { %v1035_v48 = vadd.f32 %v2232_v1, %v1034_v43  ;;  %v2256_v31 = vpop.eup %1574  ;;  %1588 = vpow2.f32 %v977_v58  ;;  %v840_v43 = vsub.f32 %v2638_v45, %v2241_v33  ;;  %v889_v58 = vsub.f32 %v2067_v5, %v2164_v14 }
 0x2f6   : > { %v2261_v19 = vpop.eup %1576  ;;  %1590 = vpow2.f32 %v981_v34  ;;  %v891_v45 = vsub.f32 %v2075_v9, %v2164_v14 }
 0x2f7   : > { %v1036_v24 = vadd.f32 %v2238_v42, %v1035_v48  ;;  %v2265_v30 = vpop.eup %1578  ;;  %1592 = vpow2.f32 %v985_v37  ;;  %v842_v48 = vsub.f32 %v2639_v28, %v2241_v33  ;;  %v907_v37 = vmul.f32 1.442695, %v840_v43 }
 0x2f8   : > { %v2270_v25 = vpop.eup %1580  ;;  %1594 = vpow2.f32 %v989_v21  ;;  %v1017_v28 = vmul.f32 1.442695, %v895_v11  ;;  %v885_v43 = vsub.f32 %v2055_v63, %v2164_v14  ;;  %v848_v11 = vsub.f32 %v2077_v10, %v2241_v33 }
 0x2f9   : > { %v1037_v15 = vadd.f32 %v2243_v36, %v1036_v24  ;;  %v2274_v7 = vpop.eup %1582  ;;  %1596 = vpow2.f32 %v1013_v41  ;;  %v911_v41 = vmul.f32 1.442695, %v842_v48  ;;  %v1009_v48 = vmul.f32 1.442695, %v891_v45 }
 0x2fa   : > { %v2279_v34 = vpop.eup %1584  ;;  %1598 = vpow2.f32 %v1021_v32  ;;  %v883_v10 = vsub.f32 %v2047_v59, %v2164_v14  ;;  %v1121_v59 = vpack.c.bf16 %v2270_v25, %v2265_v30 }
 0x2fb   : > { %v1038_v27 = vadd.f32 %v2247_v16, %v1037_v15  ;;  %v844_v15 = vsub.f32 %v2640_v55, %v2241_v33  ;;  %v2283_v46 = vpop.eup %1586  ;;  %1600 = vpow2.f32 %v1025_v53  ;;  %v1005_v55 = vmul.f32 1.442695, %v889_v58 }
 0x2fc   : > { %v2288_v21 = vpop.eup %1588  ;;  %1602 = vpow2.f32 %v903_v3  ;;  %v919_v3 = vmul.f32 1.442695, %v846_v12  ;;  %1159 = vmatpush.bf16.msra.mxu0 %v1121_v59 }
 0x2fd   : > { %v1039_v24 = vadd.f32 %v2252_v51, %v1038_v27  ;;  %v2292_v27 = vpop.eup %1590  ;;  %1604 = vpow2.f32 %v907_v37  ;;  %v915_v32 = vmul.f32 1.442695, %v844_v15  ;;  %v997_v15 = vmul.f32 1.442695, %v885_v43 }
 0x2fe   : > { %v2297_v9 = vpop.eup %1592  ;;  %1606 = vpow2.f32 %v1017_v28  ;;  %v923_v28 = vmul.f32 1.442695, %v848_v11 }
 0x2ff   : > { %v1040_v5 = vadd.f32 %v2256_v31, %v1039_v24  ;;  %v2301_v53 = vpop.eup %1594  ;;  %v850_v24 = vsub.f32 %v2097_v54, %v2241_v33  ;;  %1608 = vpow2.f32 %v911_v41  ;;  %v1001_v54 = vmul.f32 1.442695, %v887_v6 }
 0x300   : > { %v2306_v58 = vpop.eup %1596  ;;  %1610 = vpow2.f32 %v1005_v55  ;;  %v854_v41 = vsub.f32 %v1963_v17, %v2241_v33 }
 0x301   : > { %v1041_v62 = vadd.f32 %v2261_v19, %v1040_v5  ;;  %v2310_v5 = vpop.eup %1598  ;;  %1612 = vpow2.f32 %v915_v32  ;;  %v927_v43 = vmul.f32 1.442695, %v850_v24  ;;  %v993_v32 = vmul.f32 1.442695, %v883_v10 }
 0x302   : > { %v2315_v37 = vpop.eup %1600  ;;  %1614 = vpow2.f32 %v1009_v48 }
 0x303   : > { %v1042_v63 = vadd.f32 %v2265_v30, %v1041_v62  ;;  %v2641_v62 = vld [vmem:[#allocation25_spill] sm:$0xff]  ;;  %v2319_v4 = vpop.eup %1602  ;;  %1616 = vpow2.f32 %v919_v3  ;;  %v1137_v55 = vpack.c.bf16 %v2315_v37, %v2310_v5 }
 0x304   : > { %v852_v45 = vsub.f32 %v2641_v62, %v2241_v33  ;;  %v2324_v14 = vpop.eup %1604  ;;  %1618 = vpow2.f32 %v997_v15  ;;  %v1119_v15 = vpack.c.bf16 %v2261_v19, %v2256_v31  ;;  %v858_v62 = vsub.f32 %v1975_v23, %v2241_v33  ;;  %v2643_v31 = vld [vmem:[#allocation10_spill] sm:$0xff] }
 0x305   : > { %v1043_v2 = vadd.f32 %v2270_v25, %v1042_v63  ;;  %v2330_v11 = vpop.eup %1606  ;;  %v1066_v48 = vadd.f32 %v2324_v14, %v2319_v4  ;;  %v2642_v25 = vld [vmem:[#allocation9_spill] sm:$0xff]  ;;  %1620 = vpow2.f32 %v923_v28  ;;  %1178 = vmatpush.bf16.msra.mxu1 %v1137_v55  ;;  %v860_v19 = vsub.f32 %v2643_v31, %v2241_v33 }
 0x306   : > { %v2335_v30 = vpop.eup %1608  ;;  %v856_v17 = vsub.f32 %v2642_v25, %v2241_v33  ;;  %v931_v63 = vmul.f32 1.442695, %v852_v45  ;;  %1622 = vpow2.f32 %v1001_v54  ;;  %v1135_v45 = vpack.c.bf16 %v2330_v11, %v2306_v58  ;;  %1160 = vmatpush.bf16.msra.mxu0 %v1119_v15 }
 0x307   : > { %v1044_v12 = vadd.f32 %v2274_v7, %v1043_v2  ;;  %v2339_v24 = vpop.eup %1610  ;;  %v1067_v10 = vadd.f32 %v2335_v30, %v1066_v48  ;;  %1624 = vpow2.f32 %v927_v43  ;;  %v1117_v48 = vpack.c.bf16 %v2252_v51, %v2247_v16 }
 0x308   : > { %v2345_v2 = vpop.eup %1612  ;;  %1626 = vpow2.f32 %v993_v32  ;;  %v939_v23 = vmul.f32 1.442695, %v856_v17  ;;  %v947_v31 = vmul.f32 1.442695, %v860_v19 }
 0x309   : > { %v1045_v6 = vadd.f32 %v2279_v34, %v1044_v12  ;;  %v935_v12 = vmul.f32 1.442695, %v854_v41  ;;  %v2351_v28 = vpop.eup %1614  ;;  %v1068_v59 = vadd.f32 %v2345_v2, %v1067_v10  ;;  %1628 = vpow2.f32 %v931_v63  ;;  %1179 = vmatpush.bf16.msra.mxu1 %v1135_v45 }
 0x30a   : > { %v2355_v55 = vpop.eup %1616  ;;  %v943_v63 = vmul.f32 1.442695, %v858_v62  ;;  %v1133_v17 = vpack.c.bf16 %v2351_v28, %v2339_v24  ;;  %1161 = vmatpush.bf16.msra.mxu0 %v1117_v48  ;;  %v870_v62 = vsub.f32 %v2009_v40, %v2241_v33  ;;  %v1115_v48 = vpack.c.bf16 %v2243_v36, %v2238_v42 }
 0x30b   : > { %v1046_v3 = vadd.f32 %v2283_v46, %v1045_v6  ;;  %v1619_v41 = vpop.eup %1618  ;;  %v862_v6 = vsub.f32 %v1987_v29, %v2241_v33  ;;  %v1069_v32 = vadd.f32 %v2355_v55, %v1068_v59  ;;  %1630 = vpow2.f32 %v935_v12  ;;  %v2645_v12 = vld [vmem:[#allocation13_spill] sm:$0xff] }
 0x30c   : > { %v2365_v25 = vpop.eup %1620  ;;  %v866_v29 = vsub.f32 %v1999_v35, %v2241_v33  ;;  %v872_v59 = vsub.f32 %v2645_v12, %v2241_v33  ;;  %1632 = vpow2.f32 %v939_v23  ;;  %v876_v40 = vsub.f32 %v2023_v47, %v2241_v33 }
 0x30d   : > { %v1047_v54 = vadd.f32 %v2288_v21, %v1046_v3  ;;  %v2644_v3 = vld [vmem:[#allocation12_spill] sm:$0xff]  ;;  %v1623_v15 = vpop.eup %1622  ;;  %v1070_v16 = vadd.f32 %v2365_v25, %v1069_v32  ;;  %1180 = vmatpush.bf16.msra.mxu1 %v1133_v17  ;;  %1634 = vpow2.f32 %v943_v63  ;;  %v951_v23 = vmul.f32 1.442695, %v862_v6 }
 0x30e   : > { %v864_v10 = vsub.f32 %v2644_v3, %v2241_v33  ;;  %v2377_v51 = vpop.eup %1624  ;;  %v1131_v19 = vpack.c.bf16 %v1623_v15, %v1619_v41  ;;  %1162 = vmatpush.bf16.msra.mxu0 %v1115_v48  ;;  %v898_v36 = vsub.f32 %v2148_v26, %v2241_v33  ;;  %1636 = vpow2.f32 %v947_v31 }
 0x30f   : > { %v1048_v43 = vadd.f32 %v2292_v27, %v1047_v54  ;;  %v868_v54 = vsub.f32 %v2005_v38, %v2241_v33  ;;  %v874_v38 = vsub.f32 %v2017_v44, %v2241_v33  ;;  %v1071_v32 = vadd.f32 %v2377_v51, %v1070_v16 }
 0x310   : > { %v955_v12 = vmul.f32 1.442695, %v864_v10  ;;  %v959_v47 = vmul.f32 1.442695, %v866_v29  ;;  %v1113_v10 = vpack.c.bf16 %v2232_v1, %v2225_v39  ;;  %v894_v48 = vsub.f32 %v2105_v13, %v2241_v33 }
 0x311   : > { %v1049_v45 = vadd.f32 %v2297_v9, %v1048_v43  ;;  %v1627_v43 = vpop.eup %1626  ;;  %1181 = vmatpush.bf16.msra.mxu1 %v1131_v19  ;;  %v963_v63 = vmul.f32 1.442695, %v868_v54  ;;  %v900_v42 = vsub.f32 %v2160_v20, %v2241_v33  ;;  %1638 = vpow2.f32 %v951_v23 }
 0x312   : > { %v2389_v3 = vpop.eup %1628  ;;  %v1129_v26 = vpack.c.bf16 %v1627_v43, %v2301_v53  ;;  %1640 = vpow2.f32 %v955_v12  ;;  %1163 = vmatpush.bf16.msra.mxu0 %v1113_v10  ;;  %v896_v39 = vsub.f32 %v2128_v57, %v2241_v33  ;;  %v971_v1 = vmul.f32 1.442695, %v872_v59  ;;  %v2648_v10 = vld [vmem:[#allocation18_spill] sm:$0xff] }
 0x313   : > { %v1050_v35 = vadd.f32 %v2301_v53, %v1049_v45  ;;  %v878_v45 = vsub.f32 %v2027_v49, %v2241_v33  ;;  %v1072_v44 = vadd.f32 %v2389_v3, %v1071_v32  ;;  %v2396_v16 = vpop.eup %1630  ;;  %1642 = vpow2.f32 %v959_v47 }
 0x314   : > { %v2405_v32 = vpop.eup %1632  ;;  %v1023_v13 = vmul.f32 1.442695, %v898_v36  ;;  %1644 = vpow2.f32 %v963_v63  ;;  %v890_v57 = vsub.f32 %v2073_v8, %v2241_v33  ;;  %v1027_v23 = vmul.f32 1.442695, %v900_v42 }
 0x315   : > { %v1051_v17 = vadd.f32 %v1627_v43, %v1050_v35  ;;  %v1073_v35 = vadd.f32 %v2396_v16, %v1072_v44  ;;  %v2413_v31 = vpop.eup %1634  ;;  %1182 = vmatpush.bf16.msra.mxu1 %v1129_v26  ;;  %v882_v43 = vsub.f32 %v2041_v56, %v2241_v33  ;;  %v1127_v59 = vpack.c.bf16 %v2297_v9, %v2292_v27  ;;  %v1462_v26 = vld [vmem:[#allocation4] sm:$0xf] }
 0x316   : > { %v1015_v19 = vmul.f32 1.442695, %v894_v48  ;;  %v975_v12 = vmul.f32 1.442695, %v874_v38  ;;  %v1019_v44 = vmul.f32 1.442695, %v896_v39  ;;  %v886_v36 = vsub.f32 %v2057_v0, %v2241_v33 }
 0x317   : > { %v1052_v6 = vadd.f32 %v1619_v41, %v1051_v17  ;;  %v967_v41 = vmul.f32 1.442695, %v870_v62  ;;  %v1074_v54 = vadd.f32 %v2405_v32, %v1073_v35  ;;  %v2421_v62 = vpop.eup %1636  ;;  %v979_v47 = vmul.f32 1.442695, %v876_v40  ;;  %v2646_v35 = vld [vmem:[#allocation23_spill] sm:$0xff] }
 0x318   : > { %v1007_v63 = vmul.f32 1.442695, %v890_v57  ;;  %v983_v0 = vmul.f32 1.442695, %v878_v45  ;;  %v2649_v49 = vsub.f32 %v2033_v52, %v2241_v33  ;;  %v2650_v52 = vld [vmem:[#allocation19_spill] sm:$0xff] }
 0x319   : > { %v1053_v29 = vadd.f32 %v1623_v15, %v1052_v6  ;;  %v1075_v53 = vadd.f32 %v2413_v31, %v1074_v54  ;;  %v1111_v15 = vpack.c.bf16 %v2218_v22, %v2211_v61  ;;  %1646 = vpow2.f32 %v967_v41  ;;  %v2431_v61 = vpop.eup %1638  ;;  %1183 = vmatpush.bf16.msra.mxu1 %v1127_v59 }
 0x31a   : > { %v892_v22 = vsub.f32 %v2087_v18, %v2241_v33  ;;  %1648 = vpow2.f32 %v971_v1  ;;  %v2435_v8 = vpop.eup %1640  ;;  %v1125_v18 = vpack.c.bf16 %v2288_v21, %v2283_v46  ;;  %v987_v45 = vmul.f32 1.442695, %v2649_v49 }
 0x31b   : > { %v1054_v20 = vadd.f32 %v2339_v24, %v1053_v29  ;;  %v1076_v17 = vadd.f32 %v2421_v62, %v1075_v53  ;;  %1164 = vmatpush.bf16.msra.mxu0 %v1111_v15  ;;  %1650 = vpow2.f32 %v1023_v13  ;;  %v1643_v42 = vpop.eup %1642  ;;  %v1483_v29 = vld [vmem:[#allocation4 + $0x4] sm:$0xf0]  ;;  %v1123_v54 = vpack.c.bf16 %v2279_v34, %v2274_v7  ;;  %v1482_v53 = vld [vmem:[#allocation4 + $0x4] sm:$0xf]  ;;  %v1464_v15 = vld [vmem:[#allocation4 + $0x8] sm:$0xf0] }
 0x31c   : > { %1652 = vpow2.f32 %v1027_v23  ;;  %v1645_v38 = vpop.eup %1644  ;;  %v999_v13 = vmul.f32 1.442695, %v886_v36  ;;  %v884_v23 = vsub.f32 %v2650_v52, %v2241_v33  ;;  %v2473_v7 = vor.u32 %v1483_v29, %v1462_v26 }
 0x31d   : > { %v1055_v24 = vadd.f32 %v2351_v28, %v1054_v20  ;;  %v1077_v9 = vadd.f32 %v2431_v61, %v1076_v17  ;;  %v1109_v28 = vpack.c.bf16 %v2204_v50, %v2197_v60  ;;  %1654 = vpow2.f32 %v1015_v19  ;;  %1184 = vmatpush.bf16.msra.mxu1 %v1125_v18 }
 0x31e   : > { %v888_v60 = vsub.f32 %v2646_v35, %v2241_v33  ;;  %v1011_v50 = vmul.f32 1.442695, %v892_v22  ;;  %1656 = vpow2.f32 %v1019_v44  ;;  %v1122_v39 = vpack.c.bf16 %v1645_v38, %v1643_v42 }
 0x31f   : > { %v1056_v27 = vadd.f32 %v2306_v58, %v1055_v24  ;;  %v1078_v58 = vadd.f32 %v2435_v8, %v1077_v9  ;;  %1165 = vmatpush.bf16.msra.mxu0 %v1109_v28  ;;  %v2452_v40 = vpop.eup %1646  ;;  %1658 = vpow2.f32 %v975_v12  ;;  %v991_v17 = vmul.f32 1.442695, %v882_v43 }
 0x320   : > { %v2457_v41 = vpop.eup %1648  ;;  %1660 = vpow2.f32 %v979_v47  ;;  %v1003_v59 = vmul.f32 1.442695, %v888_v60  ;;  %v2486_v22 = vor.u32 %v1482_v53, %v1464_v15  ;;  %v1120_v12 = vpack.c.bf16 %v2435_v8, %v2431_v61 }
 0x321   : > { %v1057_v6 = vadd.f32 %v2330_v11, %v1056_v27  ;;  %v1079_v21 = vadd.f32 %v1643_v42, %v1078_v58  ;;  %v2647_v11 = vld [vmem:[#allocation16_spill] sm:$0xff]  ;;  %v2464_v1 = vpop.eup %1650  ;;  %1662 = vpow2.f32 %v1007_v63  ;;  %1185 = vmatpush.bf16.msra.mxu1 %v1123_v54  ;;  %v995_v28 = vmul.f32 1.442695, %v884_v23 }
 0x322   : > { %v1107_v48 = vpack.c.bf16 %v2648_v10, %v2647_v11  ;;  %v2469_v57 = vpop.eup %1652  ;;  %1664 = vpow2.f32 %v1011_v50  ;;  %v1118_v61 = vpack.c.bf16 %v2421_v62, %v2413_v31  ;;  %v1116_v58 = vpack.c.bf16 %v2405_v32, %v2396_v16  ;;  %v1485_v31 = vld [vmem:[#allocation4 + $0x14] sm:$0xf0]  ;;  %v1470_v11 = vld [vmem:[#allocation4 + $0x10] sm:$0xf]  ;;  %v1472_v10 = vld [vmem:[#allocation4 + $0x18] sm:$0xf0] }
 0x323   : > { %v1058_v46 = vadd.f32 %v2310_v5, %v1057_v6  ;;  %v1080_v20 = vadd.f32 %v1645_v38, %v1079_v21  ;;  %v2475_v34 = vpop.eup %1654  ;;  %1666 = vpow2.f32 %v983_v0  ;;  %v1138_v24 = vpack.c.bf16 %v2469_v57, %v2464_v1  ;;  %v1484_v16 = vld [vmem:[#allocation4 + $0x14] sm:$0xf] }
 0x324   : > { %1166 = vmatpush.bf16.msra.mxu0 %v1107_v48  ;;  %v2480_v19 = vpop.eup %1656  ;;  %1668 = vpow2.f32 %v987_v45  ;;  %1186 = vmatmul.bf16.vlgmr.msra.gmra.mxu1 %v2486_v22  ;;  %v1471_v48 = vor.u32 %v1485_v31, %v1470_v11  ;;  %v1475_v32 = vor.u32 %v1484_v16, %v1472_v10  ;;  %v1112_v49 = vpack.c.bf16 %v2365_v25, %v2355_v55 }
 0x325   : > { %v2467_v5 = vadd.f32 %v2315_v37, %v1058_v46  ;;  %v1081_v37 = vadd.f32 %v2452_v40, %v1080_v20  ;;  %v1659_v44 = vpop.eup %1658  ;;  %1670 = vpow2.f32 %v999_v13  ;;  %1216 = vmatpush.bf16.msrb.mxu1 %v1138_v24  ;;  %v1136_v43 = vpack.c.bf16 %v2480_v19, %v2475_v34 }
 0x326   : > { %v1661_v9 = vpop.eup %1660  ;;  %1672 = vpow2.f32 %v1003_v59  ;;  %v1114_v46 = vpack.c.bf16 %v2389_v3, %v2377_v51  ;;  %v1110_v3 = vpack.c.bf16 %v2345_v2, %v2335_v30  ;;  %v1108_v53 = vpack.c.bf16 %v2324_v14, %v2319_v4 }
 0x327   : > { %1167 = vmatmul.bf16.vlgmr.msra.gmra.mxu0 %v2473_v7  ;;  %v1082_v27 = vadd.f32 %v2457_v41, %v1081_v37  ;;  %v1663_v56 = vpop.eup %1662  ;;  %1674 = vpow2.f32 %v991_v17  ;;  %v1126_v20 = vpack.c.bf16 %v1661_v9, %v1659_v44  ;;  %v1124_v15 = vpack.c.bf16 %v2457_v41, %v2452_v40 }
 0x328   : > { %1197 = vmatpush.bf16.msrb.mxu0 %v1122_v39  ;;  %v1665_v42 = vpop.eup %1664  ;;  %1676 = vpow2.f32 %v995_v28  ;;  %v1060_v4 = vrot.slane %v2467_v5, 4  ;;  %v1249_v28 = vld [vmem:[%s1856_s10 + $0x10] sm:$0xff] }
 0x329   : > { %v1083_v33 = vadd.f32 %v1659_v44, %v1082_v27  ;;  %v1667_v8 = vpop.eup %1666  ;;  %1217 = vmatpush.bf16.msrb.mxu1 %v1136_v43  ;;  %v1134_v6 = vpack.c.bf16 %v1665_v42, %v1663_v56 }
 0x32a   : > { %v1669_v47 = vpop.eup %1668  ;;  %v1061_v14 = vadd.f32 %v1060_v4, %v2467_v5  ;;  %v1247_v5 = vld [vmem:[%s1856_s10] sm:$0xff] }
 0x32b   : > { %v1084_v36 = vadd.f32 %v1661_v9, %v1083_v33  ;;  %v1671_v18 = vpop.eup %1670  ;;  %v1128_v51 = vpack.c.bf16 %v1669_v47, %v1667_v8 }
 0x32c   : > { %1198 = vmatpush.bf16.msrb.mxu0 %v1120_v12  ;;  %v1673_v63 = vpop.eup %1672  ;;  %v1062_v2 = vrot.slane %v1061_v14, 2 }
 0x32d   : > { %v1085_v38 = vadd.f32 %v1667_v8, %v1084_v36  ;;  %1218 = vmatpush.bf16.msrb.mxu1 %v1134_v6  ;;  %v1675_v60 = vpop.eup %1674  ;;  %v1132_v50 = vpack.c.bf16 %v1673_v63, %v1671_v18 }
 0x32e   : > { %v1677_v62 = vpop.eup %1676 }
 0x32f   : > { %v1086_v35 = vadd.f32 %v1669_v47, %v1085_v38  ;;  %v1130_v29 = vpack.c.bf16 %v1677_v62, %v1675_v60 }
 0x330   : > { %1199 = vmatpush.bf16.msrb.mxu0 %v1118_v61 }
 0x331   : > { %v1087_v0 = vadd.f32 %v1675_v60, %v1086_v35  ;;  %1219 = vmatpush.bf16.msrb.mxu1 %v1132_v50  ;;  %v1253_v50 = vld [vmem:[%s1856_s10 + $0x30] sm:$0xff] }
 0x333   : > { %v1088_v21 = vadd.f32 %v1677_v62, %v1087_v0 }
 0x334   : > { %1200 = vmatpush.bf16.msrb.mxu0 %v1116_v58  ;;  %1191 = vmatmul.bf16.gmra.mxu1 %v1475_v32 }
 0x335   : > { %v1089_v26 = vadd.f32 %v1671_v18, %v1088_v21  ;;  %1220 = vmatpush.bf16.msrb.mxu1 %v1130_v29  ;;  %v1251_v18 = vld [vmem:[%s1856_s10 + $0x20] sm:$0xff] }
 0x337   : > { %1172 = vmatmul.bf16.gmra.mxu0 %v1471_v48  ;;  %v1090_v45 = vadd.f32 %v1673_v63, %v1089_v26  ;;  %v1248_v26 = vld [vmem:[%s1856_s10 + $0x8] sm:$0xff] }
 0x338   : > { %1201 = vmatpush.bf16.msrb.mxu0 %v1114_v46 }
 0x339   : > { %v1091_v54 = vadd.f32 %v1663_v56, %v1090_v45  ;;  %1221 = vmatpush.bf16.msrb.mxu1 %v1128_v51  ;;  %v1250_v51 = vld [vmem:[%s1856_s10 + $0x18] sm:$0xff] }
 0x33b   : > { %v1092_v39 = vadd.f32 %v1665_v42, %v1091_v54 }
 0x33c   : > { %1202 = vmatpush.bf16.msrb.mxu0 %v1112_v49 }
 0x33d   : > { %v1093_v13 = vadd.f32 %v2475_v34, %v1092_v39  ;;  %1222 = vmatpush.bf16.msrb.mxu1 %v1126_v20 }
 0x33f   : > { %v1094_v55 = vadd.f32 %v2480_v19, %v1093_v13 }
 0x340   : > { %1203 = vmatpush.bf16.msrb.mxu0 %v1110_v3 }
 0x341   : > { %v1095_v25 = vadd.f32 %v2464_v1, %v1094_v55  ;;  %1223 = vmatpush.bf16.msrb.mxu1 %v1124_v15  ;;  %v1063_v1 = vadd.f32 %v1062_v2, %v1061_v14 }
 0x343   : > { %v1096_v30 = vadd.f32 %v2469_v57, %v1095_v25  ;;  %v1064_v52 = vrot.slane %v1063_v1, 1  ;;  %v1252_v25 = vld [vmem:[%s1856_s10 + $0x28] sm:$0xff] }
 0x344   : > { %1204 = vmatpush.bf16.msrb.mxu0 %v1108_v53  ;;  %1224 = vmatmul.bf16.vlgmr.msrb.gmra.mxu1 %v2486_v22 }
 0x345   : > { %v1065_v40 = vadd.f32 %v1064_v52, %v1063_v1  ;;  %v1097_v37 = vrot.slane %v1096_v30, 4  ;;  %v1254_v52 = vld [vmem:[%s1856_s10 + $0x38] sm:$0xff]  ;;  %s1702_s10 = scalar_lea.hbm %s2590_s4, 128 }
 0x346   : > { %p1704_p2 = scmp.lt.s32.totalorder %s1702_s10, %s1698_s12 }
 0x347   : > { %1205 = vmatmul.bf16.vlgmr.msrb.gmra.mxu0 %v2473_v7  ;;  %1678 = vrcp.f32 %v1065_v40  ;;  %v2517_v7 = vstv %s1255_s3  ;;  %v1098_v22 = vadd.f32 %v1097_v37, %v1096_v30 }
 0x348   : > { %p1705_p3 = por %p1704_p2, %p1703_p1 }
 0x349   : > { %v1099_v9 = vrot.slane %v1098_v22, 2 }
 0x34a   : > { %p1706_p5 = pnand %p1705_p3, %p1701_p0 }
 0x34b   : > { %v1100_v42 = vadd.f32 %v1099_v9, %v1098_v22 }
 0x34d   : > { %v1679_v59 = vpop.eup %1678  ;;  %v1101_v47 = vrot.slane %v1100_v42, 1 }
 0x34f   : > { %v1102_v58 = vadd.f32 %v1101_v47, %v1100_v42 }
 0x351   : > { %1680 = vrcp.f32 %v1102_v58 }
 0x354   : > { %1229 = vmatmul.bf16.gmra.mxu1 %v1475_v32 }
 0x357   : > { %1210 = vmatmul.bf16.gmra.mxu0 %v1471_v48  ;;  %v1681_v10 = vpop.eup %1680 }
 0x3a1   : > { %v1187_v57 = vpop.f32.mrf.mxu1 }
 0x3a4   : > { %v1168_v41 = vpop.f32.mrf.mxu0 }
 0x3a5   : > { %v1188_v23 = vadd.f32 %v1187_v57, %v1168_v41 }
 0x3a7   : > { %v1237_v34 = vmul.f32 %v1679_v59, %v1188_v23 }
 0x3a9   : > { %v1257_v24 = vmul.f32 %v2517_v7, %v1237_v34  ;;  %v1189_v12 = vpop.f32.mrf.mxu1 }
 0x3ab   : > { %v1265_v17 = vadd.f32 %v1257_v24, %v1247_v5 }
 0x3ac   : > { %v1170_v19 = vpop.f32.mrf.mxu0 }
 0x3ad   : > { %1273 = vst [vmem:[%s2523_s27] sm:$0xff] %v1265_v17  ;;  %v1190_v44 = vadd.f32 %v1189_v12, %v1170_v19 }
 0x3af   : > { %v1239_v27 = vmul.f32 %v1679_v59, %v1190_v44 }
 0x3b1   : > { %v1259_v56 = vmul.f32 %v2517_v7, %v1239_v27  ;;  %v1192_v61 = vpop.f32.mrf.mxu1 }
 0x3b3   : > { %v1267_v43 = vadd.f32 %v1259_v56, %v1249_v28 }
 0x3b4   : > { %v1173_v33 = vpop.f32.mrf.mxu0 }
 0x3b5   : > { %1275 = vst [vmem:[%s2523_s27 + $0x10] sm:$0xff] %v1267_v43  ;;  %v1193_v8 = vadd.f32 %v1192_v61, %v1173_v33 }
 0x3b7   : > { %v1241_v36 = vmul.f32 %v1679_v59, %v1193_v8 }
 0x3b9   : > { %v1261_v38 = vmul.f32 %v2517_v7, %v1241_v36  ;;  %v1194_v35 = vpop.f32.mrf.mxu1 }
 0x3bb   : > { %v1269_v63 = vadd.f32 %v1261_v38, %v1251_v18 }
 0x3bc   : > { %v1175_v6 = vpop.f32.mrf.mxu0 }
 0x3bd   : > { %1277 = vst [vmem:[%s2523_s27 + $0x20] sm:$0xff] %v1269_v63  ;;  %v1195_v60 = vadd.f32 %v1194_v35, %v1175_v6 }
 0x3bf   : > { %v1243_v0 = vmul.f32 %v1679_v59, %v1195_v60 }
 0x3c1   : > { %v1263_v31 = vmul.f32 %v2517_v7, %v1243_v0  ;;  %v1225_v21 = vpop.f32.mrf.mxu1 }
 0x3c3   : > { %v1271_v46 = vadd.f32 %v1263_v31, %v1253_v50 }
 0x3c4   : > { %v1206_v62 = vpop.f32.mrf.mxu0 }
 0x3c5   : > { %1279 = vst [vmem:[%s2523_s27 + $0x30] sm:$0xff] %v1271_v46  ;;  %v1226_v11 = vadd.f32 %v1225_v21, %v1206_v62 }
 0x3c7   : > { %v1238_v48 = vmul.f32 %v1681_v10, %v1226_v11 }
 0x3c9   : > { %v1258_v29 = vmul.f32 %v2517_v7, %v1238_v48  ;;  %v1227_v49 = vpop.f32.mrf.mxu1 }
 0x3cb   : > { %v1266_v32 = vadd.f32 %v1258_v29, %v1248_v26 }
 0x3cc   : > { %v1208_v16 = vpop.f32.mrf.mxu0 }
 0x3cd   : > { %1274 = vst [vmem:[%s2523_s27 + $0x8] sm:$0xff] %v1266_v32  ;;  %v1228_v45 = vadd.f32 %v1227_v49, %v1208_v16 }
 0x3cf   : > { %v1240_v54 = vmul.f32 %v1681_v10, %v1228_v45 }
 0x3d1   : > { %v1260_v3 = vmul.f32 %v2517_v7, %v1240_v54  ;;  %v1230_v20 = vpop.f32.mrf.mxu1 }
 0x3d3   : > { %v1268_v13 = vadd.f32 %v1260_v3, %v1250_v51 }
 0x3d4   : > { %v1211_v39 = vpop.f32.mrf.mxu0 }
 0x3d5   : > { %1276 = vst [vmem:[%s2523_s27 + $0x18] sm:$0xff] %v1268_v13  ;;  %v1231_v53 = vadd.f32 %v1230_v20, %v1211_v39 }
 0x3d7   : > { %v1242_v55 = vmul.f32 %v1681_v10, %v1231_v53 }
 0x3d9   : > { %v1262_v15 = vmul.f32 %v2517_v7, %v1242_v55  ;;  %v1232_v14 = vpop.f32.mrf.mxu1 }
 0x3db   : > { %v1270_v4 = vadd.f32 %v1262_v15, %v1252_v25 }
 0x3dc   : > { %v1213_v30 = vpop.f32.mrf.mxu0 }
 0x3dd   : > { %1278 = vst [vmem:[%s2523_s27 + $0x28] sm:$0xff] %v1270_v4  ;;  %v1233_v2 = vadd.f32 %v1232_v14, %v1213_v30 }
 0x3df   : > { %v1244_v1 = vmul.f32 %v1681_v10, %v1233_v2 }
 0x3e1   : > { %v1264_v40 = vmul.f32 %v2517_v7, %v1244_v1 }
 0x3e3   : > { %v1272_v41 = vadd.f32 %v1264_v40, %v1254_v52 }
 0x3e5   : > { %1280 = vst [vmem:[%s2523_s27 + $0x38] sm:$0xff] %v1272_v41 }
 0x3e6   : > { %1709 = shalt.err (!%p1706_p5)
}
 0x3e7   : > { %s1763_s3 = smov 256   ;;  %s1764_s23 = smov 16  }
 0x3e8   : > { %1489 = dma.vmem_to_hbm [thread:$0]  (%p1833_p4), %s1297_s8, 1024, %s1299_s9, %s1282_s20, %s1763_s3, %s1763_s3, %s1764_s23  }
 0x3e9 PF: > { %p1495_p6 = scmp.ge.s32.totalorder %s1760_s22, 2  ;;  %s1313_s25 = sand.u32 1, %s1740_s17  }
 0x3ea   : > { %s1314_s27 = scalar_lea.sflag [#allocation7], %s1313_s25 }
 0x3eb   : > { %p1492_p7 = pnand %p1495_p6, %p1840_p8 }
 0x3ed   : > { %p1493_p9 = pneg %p1492_p7 }
 0x3ef   : > { %1735 = dma.done.wait (%p1493_p9), %s1314_s27, 1024  }
 0x3f0   : > { %1737 = vsyncadd (%p1493_p9), %s1314_s27, 4294966272  ;;  %s18_s22 = sadd.s32 1, %s1760_s22   ;;  %s2651_s17 = smov %s1744_s18 }
 0x3f1   : > { %p15_p10 = scmp.ge.s32.totalorder %s18_s22, 4   ;;  %s2652_s18 = smov %s1748_s19 }
 0x3f2   : > { %s2653_s19 = smov %s1846_s29  ;;  %s2654_s20 = smov %s1756_s21 }
 0x3f3   : > { %s2655_s21 = smov %s2657_s24  ;;  %17 = sbr.rel (!%p15_p10) target bundleno = 6 (0x6), region = 77 }
 0x3f8   :  { %1320 = vsyncpa [#allocation7], 1 }
 0x3f9   :  { %1322 = vsyncpa [#allocation7 + $0x1], 1 }

</bundles_post_ra>
